<compile_context>
chip_gen: v7x
topology: tpu7x:2x2x1
jax: 0.10.0
libtpu: 0.0.40
codegen_flags: <defaults>
</compile_context>

<pallas_src>
import numpy as np
import jax
import jax.numpy as jnp
from jax.experimental import pallas as pl
from jax.experimental.pallas import tpu as pltpu


# 1D binomial filter [1,4,6,4,1]/16; the 5x5 LapLoss Gaussian is its outer
# product (/256), so every conv in the pyramid is separable.
_F1D = np.array([1.0, 4.0, 6.0, 4.0, 1.0], dtype=np.float64) / 16.0


def _reflect(t, m):
    """PyTorch-style reflect index (no edge repeat) for pad <= 2."""
    if t < 0:
        return -t
    if t >= m:
        return 2 * m - 2 - t
    return t


def _down_matrix(m):
    """(m//2, m): reflect-pad(2) + 5-tap blur + stride-2 decimation, one axis."""
    assert m % 2 == 0 and m >= 4
    r = np.zeros((m // 2, m), dtype=np.float64)
    for i in range(m // 2):
        for k in range(5):
            r[i, _reflect(2 * i - 2 + k, m)] += _F1D[k]
    return r.astype(np.float32)


def _up_matrix(m):
    """(2m, m): zero-stuff to 2m + reflect-pad(2) + 5-tap blur scaled by 2 (one axis).

    Exactly reproduces the PyTorch `upsample` (incl. boundary behaviour) as a
    dense polyphase operator — no zero-stuffed buffer is ever materialized.
    """
    assert m >= 2
    f = _F1D * 2.0                       # 4*G == outer(2*f, 2*f)
    u = np.zeros((2 * m, m), dtype=np.float64)
    for y in range(2 * m):
        for k in range(5):
            t = _reflect(y - 2 + k, 2 * m)
            if t % 2 == 0:               # only even fine-grid rows are nonzero
                u[y, t // 2] += f[k]
    return u.astype(np.float32)


# ---------------------------------------------------------------------------
# In-kernel separable operator:  out[b] = left @ a3[b] @ right_t
#   a3: (bt, M, N), left: (P, M), right_t: (N, Q)  ->  (bt, P, Q)
# Lane pass  : single (bt*M, N) @ (N, Q) matmul (large M -> fills the MXU).
# Sublane pass: single batched matmul (one op, bounded live ranges).
# ---------------------------------------------------------------------------
def _sep_apply(a3, left, right_t):
    bt, M, N = a3.shape
    P = left.shape[0]
    Q = right_t.shape[1]
    y = jnp.dot(a3.reshape(bt * M, N), right_t,
                preferred_element_type=jnp.float32).reshape(bt, M, Q)
    lb = jnp.broadcast_to(left, (bt, P, M))
    return jnp.einsum('bpm,bmq->bpq', lb, y,
                      preferred_element_type=jnp.float32)


# ---------------------------------------------------------------------------
# Fully fused kernel: diff -> all pyramid levels -> per-tile scaled L1 sum.
# Kernel args: inp_ref, tgt_ref, [Rv, RhT, Uv, UhT] x levels, out_ref.
# ---------------------------------------------------------------------------
def _make_lap_kernel(num_levels, inv_counts):
    def kernel(inp_ref, tgt_ref, *refs):
        mats, o_ref = refs[:-1], refs[-1]
        # Linearity of the pyramid: build ONE pyramid of the difference image.
        cur = inp_ref[...].astype(jnp.float32) - tgt_ref[...].astype(jnp.float32)
        total = jnp.float32(0.0)
        for lvl in range(num_levels):             # static unroll over levels
            rv = mats[4 * lvl + 0][...]           # (h, H)
            rht = mats[4 * lvl + 1][...]          # (W, w)   (pre-transposed)
            uv = mats[4 * lvl + 2][...]           # (H, h)
            uht = mats[4 * lvl + 3][...]          # (w, W)   (pre-transposed)
            down = _sep_apply(cur, rv, rht)       # blur + 2x decimation
            up = _sep_apply(down, uv, uht)        # polyphase upsample
            bt, hl, wl = cur.shape
            diff2 = (cur - up).reshape(bt * hl, wl)
            # one cross-lane reduction per level; mean normalizer folded in
            total = total + jnp.sum(jnp.abs(diff2)) * inv_counts[lvl]
            cur = down
        # Lane-dense, per-tile partial output (disjoint block per grid step,
        # so the grid axis can be "parallel" / v7x 2-TC sharded).
        o_ref[...] = jnp.broadcast_to(total, o_ref.shape)
    return kernel


def _vmem_limit_bytes():
    cap = None
    try:
        cap = int(pltpu.get_tpu_info().vmem_capacity_bytes)
    except Exception:
        cap = None
    if not cap or cap <= 0:
        cap = 64 << 20                    # conservative: v7x physical VMEM
    return min((cap * 3) // 4, 96 << 20)  # ~48 MiB on v7x, ~96 MiB on v5e/v6e


def _pick_bt(batch, H, W, budget_bytes):
    """Slabs per grid step.  ~8*H*W*4 bytes/slab covers the double-buffered
    inp/tgt blocks plus the resident pyramid + matmul temporaries."""
    per_slab = 8 * H * W * 4
    bt = min(int(budget_bytes // per_slab), batch, 8)
    if bt < 1:
        # TODO(synk): add a spatially-tiled per-level fallback for images whose
        # full per-slab pyramid does not fit the VMEM budget (> ~800x800).
        raise ValueError("image too large for the fully fused LapLoss kernel")
    if batch >= 2:
        bt = min(bt, (batch + 1) // 2)    # >= 2 grid steps -> v7x can shard
    return max(bt, 1)


def lap_loss(inp, tgt, max_levels=5):
    """LapLoss forward. inp, tgt: (N, C, H, W). Matches the PyTorch reference."""
    N, C, H, W = inp.shape
    if H % (1 << max_levels) or W % (1 << max_levels):
        raise ValueError(
            f"LapLoss with max_levels={max_levels} requires H, W divisible by "
            f"{1 << max_levels} (same constraint as the PyTorch reference); got {H}x{W}.")
    if (H >> (max_levels - 1)) < 4 or (W >> (max_levels - 1)) < 4:
        raise ValueError("Spatial dims too small for a reflect pad of 2 at the "
                         "deepest pyramid level (same as the PyTorch reference).")

    B = N * C
    a = inp.reshape(B, H, W)
    b = tgt.reshape(B, H, W)

    vmem_limit = _vmem_limit_bytes()
    bt = _pick_bt(B, H, W, vmem_limit // 2)
    num_tiles = -(-B // bt)
    b_pad = num_tiles * bt
    if b_pad != B:
        # Zero-padded slabs produce diff == 0 -> contribute 0 to every L1 sum.
        pad = ((0, b_pad - B), (0, 0), (0, 0))
        a = jnp.pad(a, pad)
        b = jnp.pad(b, pad)

    # Per-level separable operators (host-built constants, Rh/Uh pre-transposed)
    # and per-level mean normalizers 1/(B*H_L*W_L) with the REAL batch size.
    mats = []
    inv_counts = []
    for lvl in range(max_levels):
        hl, wl = H >> lvl, W >> lvl
        mats += [jnp.asarray(_down_matrix(hl)),        # Rv   (hl/2, hl)
                 jnp.asarray(_down_matrix(wl).T),      # RhT  (wl, wl/2)
                 jnp.asarray(_up_matrix(hl // 2)),     # Uv   (hl, hl/2)
                 jnp.asarray(_up_matrix(wl // 2).T)]   # UhT  (wl/2, wl)
        inv_counts.append(1.0 / float(B * hl * wl))

    kernel = _make_lap_kernel(max_levels, inv_counts)

    in_specs = [pl.BlockSpec((bt, H, W), lambda i: (i, 0, 0)),
                pl.BlockSpec((bt, H, W), lambda i: (i, 0, 0))]
    in_specs += [pl.BlockSpec(tuple(m.shape), lambda i: (0, 0)) for m in mats]

    partials = pl.pallas_call(
        kernel,
        out_shape=jax.ShapeDtypeStruct((num_tiles, 8, 128), jnp.float32),
        grid=(num_tiles,),
        in_specs=in_specs,
        out_specs=pl.BlockSpec((1, 8, 128), lambda i: (i, 0, 0)),
        compiler_params=pltpu.CompilerParams(
            dimension_semantics=("parallel",),
            vmem_limit_bytes=vmem_limit),
    )(a, b, *mats)

    return jnp.sum(partials[:, 0, 0])


# ---------------------------------------------------------------------------
# Pure-JAX reference mirroring the PyTorch module exactly (two pyramids,
# explicit reflect pad, zero-stuffed upsample) — used only for the check.
# ---------------------------------------------------------------------------
def _conv_gauss_ref(x, scale):
    xp = jnp.pad(x, ((0, 0), (2, 2), (2, 2)), mode='reflect')
    g1 = jnp.array([1., 4., 6., 4., 1.], jnp.float32)
    k = (jnp.outer(g1, g1) / 256.0 * scale)[None, None]
    y = jax.lax.conv_general_dilated(
        xp[:, None], k, (1, 1), 'VALID',
        dimension_numbers=('NCHW', 'OIHW', 'NCHW'),
        precision=jax.lax.Precision.HIGHEST)
    return y[:, 0]


def _lap_loss_ref(inp, tgt, max_levels=5):
    N, C, H, W = inp.shape

    def pyramid(img):
        cur, pyr = img, []
        for _ in range(max_levels):
            filt = _conv_gauss_ref(cur, 1.0)
            down = filt[:, ::2, ::2]
            bsz, hh, ww = down.shape
            up = jnp.zeros((bsz, 2 * hh, 2 * ww), down.dtype).at[:, ::2, ::2].set(down)
            up = _conv_gauss_ref(up, 4.0)
            pyr.append(cur - up)
            cur = down
        return pyr

    a = inp.reshape(N * C, H, W).astype(jnp.float32)
    b = tgt.reshape(N * C, H, W).astype(jnp.float32)
    return sum(jnp.mean(jnp.abs(pa - pb)) for pa, pb in zip(pyramid(a), pyramid(b)))


if __name__ == "__main__":
    # max_levels=5 (module default) needs spatial dims divisible by 32 and
    # >= 64 for the reference to be well-defined; 64x64 is the smallest.
    N, C, H, W = 2, 3, 64, 64
    key = jax.random.PRNGKey(0)
    k1, k2 = jax.random.split(key)
    inp = jax.random.normal(k1, (N, C, H, W), jnp.float32)
    tgt = jax.random.normal(k2, (N, C, H, W), jnp.float32)

    loss_fn = jax.jit(lap_loss, static_argnames="max_levels")
    loss = jax.block_until_ready(loss_fn(inp, tgt, max_levels=5))

    ref = jax.block_until_ready(_lap_loss_ref(inp, tgt, max_levels=5))
    assert np.isfinite(float(loss))
    # Tolerance leaves headroom for MXU matmul rounding; typical error << 1e-4.
    np.testing.assert_allclose(float(loss), float(ref), rtol=5e-3, atol=1e-4)

    print("KERNEL_OK")
</pallas_src>

<mosaic_0001>
module attributes {stable_mosaic.version = 11 : i64} {
  func.func @kernel(%arg0: i32, %arg1: memref<3x64x64xf32, #tpu.memory_space<vmem>>, %arg2: memref<3x64x64xf32, #tpu.memory_space<vmem>>, %arg3: memref<32x64xf32, #tpu.memory_space<vmem>>, %arg4: memref<64x32xf32, #tpu.memory_space<vmem>>, %arg5: memref<64x32xf32, #tpu.memory_space<vmem>>, %arg6: memref<32x64xf32, #tpu.memory_space<vmem>>, %arg7: memref<16x32xf32, #tpu.memory_space<vmem>>, %arg8: memref<32x16xf32, #tpu.memory_space<vmem>>, %arg9: memref<32x16xf32, #tpu.memory_space<vmem>>, %arg10: memref<16x32xf32, #tpu.memory_space<vmem>>, %arg11: memref<8x16xf32, #tpu.memory_space<vmem>>, %arg12: memref<16x8xf32, #tpu.memory_space<vmem>>, %arg13: memref<16x8xf32, #tpu.memory_space<vmem>>, %arg14: memref<8x16xf32, #tpu.memory_space<vmem>>, %arg15: memref<4x8xf32, #tpu.memory_space<vmem>>, %arg16: memref<8x4xf32, #tpu.memory_space<vmem>>, %arg17: memref<8x4xf32, #tpu.memory_space<vmem>>, %arg18: memref<4x8xf32, #tpu.memory_space<vmem>>, %arg19: memref<2x4xf32, #tpu.memory_space<vmem>>, %arg20: memref<4x2xf32, #tpu.memory_space<vmem>>, %arg21: memref<4x2xf32, #tpu.memory_space<vmem>>, %arg22: memref<2x4xf32, #tpu.memory_space<vmem>>, %arg23: memref<1x8x128xf32, #tpu.memory_space<vmem>>) attributes {dimension_semantics = [#tpu.dimension_semantics<parallel>], iteration_bounds = array<i64: 2>, scalar_prefetch = 0 : i64, scratch_operands = 0 : i64, tpu.core_type = #tpu.core_type<tc>, window_params = [{transform_indices = @transform_0, window_bounds = array<i64: 3, 64, 64>}, {transform_indices = @transform_1, window_bounds = array<i64: 3, 64, 64>}, {pipeline_mode = #tpu.pipeline_mode<synchronous>, transform_indices = @transform_2, window_bounds = array<i64: 32, 64>}, {pipeline_mode = #tpu.pipeline_mode<synchronous>, transform_indices = @transform_3, window_bounds = array<i64: 64, 32>}, {pipeline_mode = #tpu.pipeline_mode<synchronous>, transform_indices = @transform_4, window_bounds = array<i64: 64, 32>}, {pipeline_mode = #tpu.pipeline_mode<synchronous>, transform_indices = @transform_5, window_bounds = array<i64: 32, 64>}, {pipeline_mode = #tpu.pipeline_mode<synchronous>, transform_indices = @transform_6, window_bounds = array<i64: 16, 32>}, {pipeline_mode = #tpu.pipeline_mode<synchronous>, transform_indices = @transform_7, window_bounds = array<i64: 32, 16>}, {pipeline_mode = #tpu.pipeline_mode<synchronous>, transform_indices = @transform_8, window_bounds = array<i64: 32, 16>}, {pipeline_mode = #tpu.pipeline_mode<synchronous>, transform_indices = @transform_9, window_bounds = array<i64: 16, 32>}, {pipeline_mode = #tpu.pipeline_mode<synchronous>, transform_indices = @transform_10, window_bounds = array<i64: 8, 16>}, {pipeline_mode = #tpu.pipeline_mode<synchronous>, transform_indices = @transform_11, window_bounds = array<i64: 16, 8>}, {pipeline_mode = #tpu.pipeline_mode<synchronous>, transform_indices = @transform_12, window_bounds = array<i64: 16, 8>}, {pipeline_mode = #tpu.pipeline_mode<synchronous>, transform_indices = @transform_13, window_bounds = array<i64: 8, 16>}, {pipeline_mode = #tpu.pipeline_mode<synchronous>, transform_indices = @transform_14, window_bounds = array<i64: 4, 8>}, {pipeline_mode = #tpu.pipeline_mode<synchronous>, transform_indices = @transform_15, window_bounds = array<i64: 8, 4>}, {pipeline_mode = #tpu.pipeline_mode<synchronous>, transform_indices = @transform_16, window_bounds = array<i64: 8, 4>}, {pipeline_mode = #tpu.pipeline_mode<synchronous>, transform_indices = @transform_17, window_bounds = array<i64: 4, 8>}, {pipeline_mode = #tpu.pipeline_mode<synchronous>, transform_indices = @transform_18, window_bounds = array<i64: 2, 4>}, {pipeline_mode = #tpu.pipeline_mode<synchronous>, transform_indices = @transform_19, window_bounds = array<i64: 4, 2>}, {pipeline_mode = #tpu.pipeline_mode<synchronous>, transform_indices = @transform_20, window_bounds = array<i64: 4, 2>}, {pipeline_mode = #tpu.pipeline_mode<synchronous>, transform_indices = @transform_21, window_bounds = array<i64: 2, 4>}, {transform_indices = @transform_22, window_bounds = array<i64: 1, 8, 128>}]} {
    %c0 = arith.constant 0 : index
    %c0_0 = arith.constant 0 : index
    %c0_1 = arith.constant 0 : index
    %0 = vector.load %arg1[%c0, %c0_0, %c0_1] : memref<3x64x64xf32, #tpu.memory_space<vmem>>, vector<3x64x64xf32>
    %c0_2 = arith.constant 0 : index
    %c0_3 = arith.constant 0 : index
    %c0_4 = arith.constant 0 : index
    %1 = vector.load %arg2[%c0_2, %c0_3, %c0_4] : memref<3x64x64xf32, #tpu.memory_space<vmem>>, vector<3x64x64xf32>
    %2 = arith.subf %0, %1 : vector<3x64x64xf32>
    %c0_5 = arith.constant 0 : index
    %c0_6 = arith.constant 0 : index
    %3 = vector.load %arg3[%c0_5, %c0_6] : memref<32x64xf32, #tpu.memory_space<vmem>>, vector<32x64xf32>
    %c0_7 = arith.constant 0 : index
    %c0_8 = arith.constant 0 : index
    %4 = vector.load %arg4[%c0_7, %c0_8] : memref<64x32xf32, #tpu.memory_space<vmem>>, vector<64x32xf32>
    %c0_9 = arith.constant 0 : index
    %c0_10 = arith.constant 0 : index
    %5 = vector.load %arg5[%c0_9, %c0_10] : memref<64x32xf32, #tpu.memory_space<vmem>>, vector<64x32xf32>
    %c0_11 = arith.constant 0 : index
    %c0_12 = arith.constant 0 : index
    %6 = vector.load %arg6[%c0_11, %c0_12] : memref<32x64xf32, #tpu.memory_space<vmem>>, vector<32x64xf32>
    %7 = vector.shape_cast %2 : vector<3x64x64xf32> to vector<192x64xf32>
    %cst = arith.constant dense<0.000000e+00> : vector<192x32xf32>
    %8 = tpu.matmul %7, %4, %cst {dimension_numbers = #tpu.dot_dimension_numbers<[1], [0], [0], [1], [0, 0, 1, 1], [], []>} : vector<192x64xf32>, vector<64x32xf32>, vector<192x32xf32> -> vector<192x32xf32>
    %9 = vector.shape_cast %8 : vector<192x32xf32> to vector<3x64x32xf32>
    %10 = vector.shape_cast %3 : vector<32x64xf32> to vector<1x32x64xf32>
    %11 = vector.broadcast %10 : vector<1x32x64xf32> to vector<3x32x64xf32>
    "tpu.trace_start"() <{level = 10 : i32, message = "bpm,bmq->bpq"}> : () -> ()
    %cst_13 = arith.constant dense<0.000000e+00> : vector<3x32x32xf32>
    %12 = tpu.matmul %11, %9, %cst_13 {dimension_numbers = #tpu.dot_dimension_numbers<[2], [1], [1], [2], [0, 0, 0, 1, 1, 2], [0], [0]>} : vector<3x32x64xf32>, vector<3x64x32xf32>, vector<3x32x32xf32> -> vector<3x32x32xf32>
    "tpu.trace_stop"() : () -> ()
    %13 = vector.shape_cast %12 : vector<3x32x32xf32> to vector<96x32xf32>
    %cst_14 = arith.constant dense<0.000000e+00> : vector<96x64xf32>
    %14 = tpu.matmul %13, %6, %cst_14 {dimension_numbers = #tpu.dot_dimension_numbers<[1], [0], [0], [1], [0, 0, 1, 1], [], []>} : vector<96x32xf32>, vector<32x64xf32>, vector<96x64xf32> -> vector<96x64xf32>
    %15 = vector.shape_cast %14 : vector<96x64xf32> to vector<3x32x64xf32>
    %16 = vector.shape_cast %5 : vector<64x32xf32> to vector<1x64x32xf32>
    %17 = vector.broadcast %16 : vector<1x64x32xf32> to vector<3x64x32xf32>
    "tpu.trace_start"() <{level = 10 : i32, message = "bpm,bmq->bpq"}> : () -> ()
    %cst_15 = arith.constant dense<0.000000e+00> : vector<3x64x64xf32>
    %18 = tpu.matmul %17, %15, %cst_15 {dimension_numbers = #tpu.dot_dimension_numbers<[2], [1], [1], [2], [0, 0, 0, 1, 1, 2], [0], [0]>} : vector<3x64x32xf32>, vector<3x32x64xf32>, vector<3x64x64xf32> -> vector<3x64x64xf32>
    "tpu.trace_stop"() : () -> ()
    %19 = arith.subf %2, %18 : vector<3x64x64xf32>
    %20 = vector.shape_cast %19 : vector<3x64x64xf32> to vector<192x64xf32>
    %21 = math.absf %20 : vector<192x64xf32>
    %22 = vector.shape_cast %21 : vector<192x64xf32> to vector<1x192x64xf32>
    %cst_16 = arith.constant dense<0.000000e+00> : vector<1xf32>
    %23 = vector.multi_reduction <add>, %22, %cst_16 [1, 2] : vector<1x192x64xf32> to vector<1xf32>
    %24 = vector.shape_cast %23 : vector<1xf32> to vector<1x1x1xf32>
    %25 = vector.extract %24[0, 0, 0] : f32 from vector<1x1x1xf32>
    %cst_17 = arith.constant 4.06901054E-5 : f32
    %26 = arith.mulf %25, %cst_17 : f32
    %cst_18 = arith.constant 0.000000e+00 : f32
    %27 = arith.addf %cst_18, %26 : f32
    %c0_19 = arith.constant 0 : index
    %c0_20 = arith.constant 0 : index
    %28 = vector.load %arg7[%c0_19, %c0_20] : memref<16x32xf32, #tpu.memory_space<vmem>>, vector<16x32xf32>
    %c0_21 = arith.constant 0 : index
    %c0_22 = arith.constant 0 : index
    %29 = vector.load %arg8[%c0_21, %c0_22] : memref<32x16xf32, #tpu.memory_space<vmem>>, vector<32x16xf32>
    %c0_23 = arith.constant 0 : index
    %c0_24 = arith.constant 0 : index
    %30 = vector.load %arg9[%c0_23, %c0_24] : memref<32x16xf32, #tpu.memory_space<vmem>>, vector<32x16xf32>
    %c0_25 = arith.constant 0 : index
    %c0_26 = arith.constant 0 : index
    %31 = vector.load %arg10[%c0_25, %c0_26] : memref<16x32xf32, #tpu.memory_space<vmem>>, vector<16x32xf32>
    %32 = vector.shape_cast %12 : vector<3x32x32xf32> to vector<96x32xf32>
    %cst_27 = arith.constant dense<0.000000e+00> : vector<96x16xf32>
    %33 = tpu.matmul %32, %29, %cst_27 {dimension_numbers = #tpu.dot_dimension_numbers<[1], [0], [0], [1], [0, 0, 1, 1], [], []>} : vector<96x32xf32>, vector<32x16xf32>, vector<96x16xf32> -> vector<96x16xf32>
    %34 = vector.shape_cast %33 : vector<96x16xf32> to vector<3x32x16xf32>
    %35 = vector.shape_cast %28 : vector<16x32xf32> to vector<1x16x32xf32>
    %36 = vector.broadcast %35 : vector<1x16x32xf32> to vector<3x16x32xf32>
    "tpu.trace_start"() <{level = 10 : i32, message = "bpm,bmq->bpq"}> : () -> ()
    %cst_28 = arith.constant dense<0.000000e+00> : vector<3x16x16xf32>
    %37 = tpu.matmul %36, %34, %cst_28 {dimension_numbers = #tpu.dot_dimension_numbers<[2], [1], [1], [2], [0, 0, 0, 1, 1, 2], [0], [0]>} : vector<3x16x32xf32>, vector<3x32x16xf32>, vector<3x16x16xf32> -> vector<3x16x16xf32>
    "tpu.trace_stop"() : () -> ()
    %38 = vector.shape_cast %37 : vector<3x16x16xf32> to vector<48x16xf32>
    %cst_29 = arith.constant dense<0.000000e+00> : vector<48x32xf32>
    %39 = tpu.matmul %38, %31, %cst_29 {dimension_numbers = #tpu.dot_dimension_numbers<[1], [0], [0], [1], [0, 0, 1, 1], [], []>} : vector<48x16xf32>, vector<16x32xf32>, vector<48x32xf32> -> vector<48x32xf32>
    %40 = vector.shape_cast %39 : vector<48x32xf32> to vector<3x16x32xf32>
    %41 = vector.shape_cast %30 : vector<32x16xf32> to vector<1x32x16xf32>
    %42 = vector.broadcast %41 : vector<1x32x16xf32> to vector<3x32x16xf32>
    "tpu.trace_start"() <{level = 10 : i32, message = "bpm,bmq->bpq"}> : () -> ()
    %cst_30 = arith.constant dense<0.000000e+00> : vector<3x32x32xf32>
    %43 = tpu.matmul %42, %40, %cst_30 {dimension_numbers = #tpu.dot_dimension_numbers<[2], [1], [1], [2], [0, 0, 0, 1, 1, 2], [0], [0]>} : vector<3x32x16xf32>, vector<3x16x32xf32>, vector<3x32x32xf32> -> vector<3x32x32xf32>
    "tpu.trace_stop"() : () -> ()
    %44 = arith.subf %12, %43 : vector<3x32x32xf32>
    %45 = vector.shape_cast %44 : vector<3x32x32xf32> to vector<96x32xf32>
    %46 = math.absf %45 : vector<96x32xf32>
    %47 = vector.shape_cast %46 : vector<96x32xf32> to vector<1x96x32xf32>
    %cst_31 = arith.constant dense<0.000000e+00> : vector<1xf32>
    %48 = vector.multi_reduction <add>, %47, %cst_31 [1, 2] : vector<1x96x32xf32> to vector<1xf32>
    %49 = vector.shape_cast %48 : vector<1xf32> to vector<1x1x1xf32>
    %50 = vector.extract %49[0, 0, 0] : f32 from vector<1x1x1xf32>
    %cst_32 = arith.constant 1.62760422E-4 : f32
    %51 = arith.mulf %50, %cst_32 : f32
    %52 = arith.addf %27, %51 : f32
    %c0_33 = arith.constant 0 : index
    %c0_34 = arith.constant 0 : index
    %53 = vector.load %arg11[%c0_33, %c0_34] : memref<8x16xf32, #tpu.memory_space<vmem>>, vector<8x16xf32>
    %c0_35 = arith.constant 0 : index
    %c0_36 = arith.constant 0 : index
    %54 = vector.load %arg12[%c0_35, %c0_36] : memref<16x8xf32, #tpu.memory_space<vmem>>, vector<16x8xf32>
    %c0_37 = arith.constant 0 : index
    %c0_38 = arith.constant 0 : index
    %55 = vector.load %arg13[%c0_37, %c0_38] : memref<16x8xf32, #tpu.memory_space<vmem>>, vector<16x8xf32>
    %c0_39 = arith.constant 0 : index
    %c0_40 = arith.constant 0 : index
    %56 = vector.load %arg14[%c0_39, %c0_40] : memref<8x16xf32, #tpu.memory_space<vmem>>, vector<8x16xf32>
    %57 = vector.shape_cast %37 : vector<3x16x16xf32> to vector<48x16xf32>
    %cst_41 = arith.constant dense<0.000000e+00> : vector<48x8xf32>
    %58 = tpu.matmul %57, %54, %cst_41 {dimension_numbers = #tpu.dot_dimension_numbers<[1], [0], [0], [1], [0, 0, 1, 1], [], []>} : vector<48x16xf32>, vector<16x8xf32>, vector<48x8xf32> -> vector<48x8xf32>
    %59 = vector.shape_cast %58 : vector<48x8xf32> to vector<3x16x8xf32>
    %60 = vector.shape_cast %53 : vector<8x16xf32> to vector<1x8x16xf32>
    %61 = vector.broadcast %60 : vector<1x8x16xf32> to vector<3x8x16xf32>
    "tpu.trace_start"() <{level = 10 : i32, message = "bpm,bmq->bpq"}> : () -> ()
    %cst_42 = arith.constant dense<0.000000e+00> : vector<3x8x8xf32>
    %62 = tpu.matmul %61, %59, %cst_42 {dimension_numbers = #tpu.dot_dimension_numbers<[2], [1], [1], [2], [0, 0, 0, 1, 1, 2], [0], [0]>} : vector<3x8x16xf32>, vector<3x16x8xf32>, vector<3x8x8xf32> -> vector<3x8x8xf32>
    "tpu.trace_stop"() : () -> ()
    %63 = vector.shape_cast %62 : vector<3x8x8xf32> to vector<24x8xf32>
    %cst_43 = arith.constant dense<0.000000e+00> : vector<24x16xf32>
    %64 = tpu.matmul %63, %56, %cst_43 {dimension_numbers = #tpu.dot_dimension_numbers<[1], [0], [0], [1], [0, 0, 1, 1], [], []>} : vector<24x8xf32>, vector<8x16xf32>, vector<24x16xf32> -> vector<24x16xf32>
    %65 = vector.shape_cast %64 : vector<24x16xf32> to vector<3x8x16xf32>
    %66 = vector.shape_cast %55 : vector<16x8xf32> to vector<1x16x8xf32>
    %67 = vector.broadcast %66 : vector<1x16x8xf32> to vector<3x16x8xf32>
    "tpu.trace_start"() <{level = 10 : i32, message = "bpm,bmq->bpq"}> : () -> ()
    %cst_44 = arith.constant dense<0.000000e+00> : vector<3x16x16xf32>
    %68 = tpu.matmul %67, %65, %cst_44 {dimension_numbers = #tpu.dot_dimension_numbers<[2], [1], [1], [2], [0, 0, 0, 1, 1, 2], [0], [0]>} : vector<3x16x8xf32>, vector<3x8x16xf32>, vector<3x16x16xf32> -> vector<3x16x16xf32>
    "tpu.trace_stop"() : () -> ()
    %69 = arith.subf %37, %68 : vector<3x16x16xf32>
    %70 = vector.shape_cast %69 : vector<3x16x16xf32> to vector<48x16xf32>
    %71 = math.absf %70 : vector<48x16xf32>
    %72 = vector.shape_cast %71 : vector<48x16xf32> to vector<1x48x16xf32>
    %cst_45 = arith.constant dense<0.000000e+00> : vector<1xf32>
    %73 = vector.multi_reduction <add>, %72, %cst_45 [1, 2] : vector<1x48x16xf32> to vector<1xf32>
    %74 = vector.shape_cast %73 : vector<1xf32> to vector<1x1x1xf32>
    %75 = vector.extract %74[0, 0, 0] : f32 from vector<1x1x1xf32>
    %cst_46 = arith.constant 6.51041686E-4 : f32
    %76 = arith.mulf %75, %cst_46 : f32
    %77 = arith.addf %52, %76 : f32
    %c0_47 = arith.constant 0 : index
    %c0_48 = arith.constant 0 : index
    %78 = vector.load %arg15[%c0_47, %c0_48] : memref<4x8xf32, #tpu.memory_space<vmem>>, vector<4x8xf32>
    %c0_49 = arith.constant 0 : index
    %c0_50 = arith.constant 0 : index
    %79 = vector.load %arg16[%c0_49, %c0_50] : memref<8x4xf32, #tpu.memory_space<vmem>>, vector<8x4xf32>
    %c0_51 = arith.constant 0 : index
    %c0_52 = arith.constant 0 : index
    %80 = vector.load %arg17[%c0_51, %c0_52] : memref<8x4xf32, #tpu.memory_space<vmem>>, vector<8x4xf32>
    %c0_53 = arith.constant 0 : index
    %c0_54 = arith.constant 0 : index
    %81 = vector.load %arg18[%c0_53, %c0_54] : memref<4x8xf32, #tpu.memory_space<vmem>>, vector<4x8xf32>
    %82 = vector.shape_cast %62 : vector<3x8x8xf32> to vector<24x8xf32>
    %cst_55 = arith.constant dense<0.000000e+00> : vector<24x4xf32>
    %83 = tpu.matmul %82, %79, %cst_55 {dimension_numbers = #tpu.dot_dimension_numbers<[1], [0], [0], [1], [0, 0, 1, 1], [], []>} : vector<24x8xf32>, vector<8x4xf32>, vector<24x4xf32> -> vector<24x4xf32>
    %84 = vector.shape_cast %83 : vector<24x4xf32> to vector<3x8x4xf32>
    %85 = vector.shape_cast %78 : vector<4x8xf32> to vector<1x4x8xf32>
    %86 = vector.broadcast %85 : vector<1x4x8xf32> to vector<3x4x8xf32>
    "tpu.trace_start"() <{level = 10 : i32, message = "bpm,bmq->bpq"}> : () -> ()
    %cst_56 = arith.constant dense<0.000000e+00> : vector<3x4x4xf32>
    %87 = tpu.matmul %86, %84, %cst_56 {dimension_numbers = #tpu.dot_dimension_numbers<[2], [1], [1], [2], [0, 0, 0, 1, 1, 2], [0], [0]>} : vector<3x4x8xf32>, vector<3x8x4xf32>, vector<3x4x4xf32> -> vector<3x4x4xf32>
    "tpu.trace_stop"() : () -> ()
    %88 = vector.shape_cast %87 : vector<3x4x4xf32> to vector<12x4xf32>
    %cst_57 = arith.constant dense<0.000000e+00> : vector<12x8xf32>
    %89 = tpu.matmul %88, %81, %cst_57 {dimension_numbers = #tpu.dot_dimension_numbers<[1], [0], [0], [1], [0, 0, 1, 1], [], []>} : vector<12x4xf32>, vector<4x8xf32>, vector<12x8xf32> -> vector<12x8xf32>
    %90 = vector.shape_cast %89 : vector<12x8xf32> to vector<3x4x8xf32>
    %91 = vector.shape_cast %80 : vector<8x4xf32> to vector<1x8x4xf32>
    %92 = vector.broadcast %91 : vector<1x8x4xf32> to vector<3x8x4xf32>
    "tpu.trace_start"() <{level = 10 : i32, message = "bpm,bmq->bpq"}> : () -> ()
    %cst_58 = arith.constant dense<0.000000e+00> : vector<3x8x8xf32>
    %93 = tpu.matmul %92, %90, %cst_58 {dimension_numbers = #tpu.dot_dimension_numbers<[2], [1], [1], [2], [0, 0, 0, 1, 1, 2], [0], [0]>} : vector<3x8x4xf32>, vector<3x4x8xf32>, vector<3x8x8xf32> -> vector<3x8x8xf32>
    "tpu.trace_stop"() : () -> ()
    %94 = arith.subf %62, %93 : vector<3x8x8xf32>
    %95 = vector.shape_cast %94 : vector<3x8x8xf32> to vector<24x8xf32>
    %96 = math.absf %95 : vector<24x8xf32>
    %97 = vector.shape_cast %96 : vector<24x8xf32> to vector<1x24x8xf32>
    %cst_59 = arith.constant dense<0.000000e+00> : vector<1xf32>
    %98 = vector.multi_reduction <add>, %97, %cst_59 [1, 2] : vector<1x24x8xf32> to vector<1xf32>
    %99 = vector.shape_cast %98 : vector<1xf32> to vector<1x1x1xf32>
    %100 = vector.extract %99[0, 0, 0] : f32 from vector<1x1x1xf32>
    %cst_60 = arith.constant 0.00260416674 : f32
    %101 = arith.mulf %100, %cst_60 : f32
    %102 = arith.addf %77, %101 : f32
    %c0_61 = arith.constant 0 : index
    %c0_62 = arith.constant 0 : index
    %103 = vector.load %arg19[%c0_61, %c0_62] : memref<2x4xf32, #tpu.memory_space<vmem>>, vector<2x4xf32>
    %c0_63 = arith.constant 0 : index
    %c0_64 = arith.constant 0 : index
    %104 = vector.load %arg20[%c0_63, %c0_64] : memref<4x2xf32, #tpu.memory_space<vmem>>, vector<4x2xf32>
    %c0_65 = arith.constant 0 : index
    %c0_66 = arith.constant 0 : index
    %105 = vector.load %arg21[%c0_65, %c0_66] : memref<4x2xf32, #tpu.memory_space<vmem>>, vector<4x2xf32>
    %c0_67 = arith.constant 0 : index
    %c0_68 = arith.constant 0 : index
    %106 = vector.load %arg22[%c0_67, %c0_68] : memref<2x4xf32, #tpu.memory_space<vmem>>, vector<2x4xf32>
    %107 = vector.shape_cast %87 : vector<3x4x4xf32> to vector<12x4xf32>
    %cst_69 = arith.constant dense<0.000000e+00> : vector<12x2xf32>
    %108 = tpu.matmul %107, %104, %cst_69 {dimension_numbers = #tpu.dot_dimension_numbers<[1], [0], [0], [1], [0, 0, 1, 1], [], []>} : vector<12x4xf32>, vector<4x2xf32>, vector<12x2xf32> -> vector<12x2xf32>
    %109 = vector.shape_cast %108 : vector<12x2xf32> to vector<3x4x2xf32>
    %110 = vector.shape_cast %103 : vector<2x4xf32> to vector<1x2x4xf32>
    %111 = vector.broadcast %110 : vector<1x2x4xf32> to vector<3x2x4xf32>
    "tpu.trace_start"() <{level = 10 : i32, message = "bpm,bmq->bpq"}> : () -> ()
    %cst_70 = arith.constant dense<0.000000e+00> : vector<3x2x2xf32>
    %112 = tpu.matmul %111, %109, %cst_70 {dimension_numbers = #tpu.dot_dimension_numbers<[2], [1], [1], [2], [0, 0, 0, 1, 1, 2], [0], [0]>} : vector<3x2x4xf32>, vector<3x4x2xf32>, vector<3x2x2xf32> -> vector<3x2x2xf32>
    "tpu.trace_stop"() : () -> ()
    %113 = vector.shape_cast %112 : vector<3x2x2xf32> to vector<6x2xf32>
    %cst_71 = arith.constant dense<0.000000e+00> : vector<6x4xf32>
    %114 = tpu.matmul %113, %106, %cst_71 {dimension_numbers = #tpu.dot_dimension_numbers<[1], [0], [0], [1], [0, 0, 1, 1], [], []>} : vector<6x2xf32>, vector<2x4xf32>, vector<6x4xf32> -> vector<6x4xf32>
    %115 = vector.shape_cast %114 : vector<6x4xf32> to vector<3x2x4xf32>
    %116 = vector.shape_cast %105 : vector<4x2xf32> to vector<1x4x2xf32>
    %117 = vector.broadcast %116 : vector<1x4x2xf32> to vector<3x4x2xf32>
    "tpu.trace_start"() <{level = 10 : i32, message = "bpm,bmq->bpq"}> : () -> ()
    %cst_72 = arith.constant dense<0.000000e+00> : vector<3x4x4xf32>
    %118 = tpu.matmul %117, %115, %cst_72 {dimension_numbers = #tpu.dot_dimension_numbers<[2], [1], [1], [2], [0, 0, 0, 1, 1, 2], [0], [0]>} : vector<3x4x2xf32>, vector<3x2x4xf32>, vector<3x4x4xf32> -> vector<3x4x4xf32>
    "tpu.trace_stop"() : () -> ()
    %119 = arith.subf %87, %118 : vector<3x4x4xf32>
    %120 = vector.shape_cast %119 : vector<3x4x4xf32> to vector<12x4xf32>
    %121 = math.absf %120 : vector<12x4xf32>
    %122 = vector.shape_cast %121 : vector<12x4xf32> to vector<1x12x4xf32>
    %cst_73 = arith.constant dense<0.000000e+00> : vector<1xf32>
    %123 = vector.multi_reduction <add>, %122, %cst_73 [1, 2] : vector<1x12x4xf32> to vector<1xf32>
    %124 = vector.shape_cast %123 : vector<1xf32> to vector<1x1x1xf32>
    %125 = vector.extract %124[0, 0, 0] : f32 from vector<1x1x1xf32>
    %cst_74 = arith.constant 0.010416667 : f32
    %126 = arith.mulf %125, %cst_74 : f32
    %127 = arith.addf %102, %126 : f32
    %128 = vector.broadcast %127 : f32 to vector<1x8x128xf32>
    %c0_75 = arith.constant 0 : index
    %c0_76 = arith.constant 0 : index
    %c0_77 = arith.constant 0 : index
    %129 = vector.load %arg23[%c0_75, %c0_76, %c0_77] : memref<1x8x128xf32, #tpu.memory_space<vmem>>, vector<1x8x128xf32>
    tpu.vector_store %arg23[%c0_75, %c0_76, %c0_77], %128 {strides = array<i32>} : memref<1x8x128xf32, #tpu.memory_space<vmem>>, vector<1x8x128xf32>,
    return
  }
  func.func @transform_0(%arg0: i32) -> (i32, i32, i32) {
    %c0_i32 = arith.constant 0 : i32
    %c0_i32_0 = arith.constant 0 : i32
    %c0_i32_1 = arith.constant 0 : i32
    return %arg0, %c0_i32, %c0_i32_0 : i32, i32, i32
  }
  func.func @transform_1(%arg0: i32) -> (i32, i32, i32) {
    %c0_i32 = arith.constant 0 : i32
    %c0_i32_0 = arith.constant 0 : i32
    %c0_i32_1 = arith.constant 0 : i32
    return %arg0, %c0_i32, %c0_i32_0 : i32, i32, i32
  }
  func.func @transform_2(%arg0: i32) -> (i32, i32) {
    %c0_i32 = arith.constant 0 : i32
    %c0_i32_0 = arith.constant 0 : i32
    %c0_i32_1 = arith.constant 0 : i32
    return %c0_i32, %c0_i32_0 : i32, i32
  }
  func.func @transform_3(%arg0: i32) -> (i32, i32) {
    %c0_i32 = arith.constant 0 : i32
    %c0_i32_0 = arith.constant 0 : i32
    %c0_i32_1 = arith.constant 0 : i32
    return %c0_i32, %c0_i32_0 : i32, i32
  }
  func.func @transform_4(%arg0: i32) -> (i32, i32) {
    %c0_i32 = arith.constant 0 : i32
    %c0_i32_0 = arith.constant 0 : i32
    %c0_i32_1 = arith.constant 0 : i32
    return %c0_i32, %c0_i32_0 : i32, i32
  }
  func.func @transform_5(%arg0: i32) -> (i32, i32) {
    %c0_i32 = arith.constant 0 : i32
    %c0_i32_0 = arith.constant 0 : i32
    %c0_i32_1 = arith.constant 0 : i32
    return %c0_i32, %c0_i32_0 : i32, i32
  }
  func.func @transform_6(%arg0: i32) -> (i32, i32) {
    %c0_i32 = arith.constant 0 : i32
    %c0_i32_0 = arith.constant 0 : i32
    %c0_i32_1 = arith.constant 0 : i32
    return %c0_i32, %c0_i32_0 : i32, i32
  }
  func.func @transform_7(%arg0: i32) -> (i32, i32) {
    %c0_i32 = arith.constant 0 : i32
    %c0_i32_0 = arith.constant 0 : i32
    %c0_i32_1 = arith.constant 0 : i32
    return %c0_i32, %c0_i32_0 : i32, i32
  }
  func.func @transform_8(%arg0: i32) -> (i32, i32) {
    %c0_i32 = arith.constant 0 : i32
    %c0_i32_0 = arith.constant 0 : i32
    %c0_i32_1 = arith.constant 0 : i32
    return %c0_i32, %c0_i32_0 : i32, i32
  }
  func.func @transform_9(%arg0: i32) -> (i32, i32) {
    %c0_i32 = arith.constant 0 : i32
    %c0_i32_0 = arith.constant 0 : i32
    %c0_i32_1 = arith.constant 0 : i32
    return %c0_i32, %c0_i32_0 : i32, i32
  }
  func.func @transform_10(%arg0: i32) -> (i32, i32) {
    %c0_i32 = arith.constant 0 : i32
    %c0_i32_0 = arith.constant 0 : i32
    %c0_i32_1 = arith.constant 0 : i32
    return %c0_i32, %c0_i32_0 : i32, i32
  }
  func.func @transform_11(%arg0: i32) -> (i32, i32) {
    %c0_i32 = arith.constant 0 : i32
    %c0_i32_0 = arith.constant 0 : i32
    %c0_i32_1 = arith.constant 0 : i32
    return %c0_i32, %c0_i32_0 : i32, i32
  }
  func.func @transform_12(%arg0: i32) -> (i32, i32) {
    %c0_i32 = arith.constant 0 : i32
    %c0_i32_0 = arith.constant 0 : i32
    %c0_i32_1 = arith.constant 0 : i32
    return %c0_i32, %c0_i32_0 : i32, i32
  }
  func.func @transform_13(%arg0: i32) -> (i32, i32) {
    %c0_i32 = arith.constant 0 : i32
    %c0_i32_0 = arith.constant 0 : i32
    %c0_i32_1 = arith.constant 0 : i32
    return %c0_i32, %c0_i32_0 : i32, i32
  }
  func.func @transform_14(%arg0: i32) -> (i32, i32) {
    %c0_i32 = arith.constant 0 : i32
    %c0_i32_0 = arith.constant 0 : i32
    %c0_i32_1 = arith.constant 0 : i32
    return %c0_i32, %c0_i32_0 : i32, i32
  }
  func.func @transform_15(%arg0: i32) -> (i32, i32) {
    %c0_i32 = arith.constant 0 : i32
    %c0_i32_0 = arith.constant 0 : i32
    %c0_i32_1 = arith.constant 0 : i32
    return %c0_i32, %c0_i32_0 : i32, i32
  }
  func.func @transform_16(%arg0: i32) -> (i32, i32) {
    %c0_i32 = arith.constant 0 : i32
    %c0_i32_0 = arith.constant 0 : i32
    %c0_i32_1 = arith.constant 0 : i32
    return %c0_i32, %c0_i32_0 : i32, i32
  }
  func.func @transform_17(%arg0: i32) -> (i32, i32) {
    %c0_i32 = arith.constant 0 : i32
    %c0_i32_0 = arith.constant 0 : i32
    %c0_i32_1 = arith.constant 0 : i32
    return %c0_i32, %c0_i32_0 : i32, i32
  }
  func.func @transform_18(%arg0: i32) -> (i32, i32) {
    %c0_i32 = arith.constant 0 : i32
    %c0_i32_0 = arith.constant 0 : i32
    %c0_i32_1 = arith.constant 0 : i32
    return %c0_i32, %c0_i32_0 : i32, i32
  }
  func.func @transform_19(%arg0: i32) -> (i32, i32) {
    %c0_i32 = arith.constant 0 : i32
    %c0_i32_0 = arith.constant 0 : i32
    %c0_i32_1 = arith.constant 0 : i32
    return %c0_i32, %c0_i32_0 : i32, i32
  }
  func.func @transform_20(%arg0: i32) -> (i32, i32) {
    %c0_i32 = arith.constant 0 : i32
    %c0_i32_0 = arith.constant 0 : i32
    %c0_i32_1 = arith.constant 0 : i32
    return %c0_i32, %c0_i32_0 : i32, i32
  }
  func.func @transform_21(%arg0: i32) -> (i32, i32) {
    %c0_i32 = arith.constant 0 : i32
    %c0_i32_0 = arith.constant 0 : i32
    %c0_i32_1 = arith.constant 0 : i32
    return %c0_i32, %c0_i32_0 : i32, i32
  }
  func.func @transform_22(%arg0: i32) -> (i32, i32, i32) {
    %c0_i32 = arith.constant 0 : i32
    %c0_i32_0 = arith.constant 0 : i32
    %c0_i32_1 = arith.constant 0 : i32
    return %arg0, %c0_i32, %c0_i32_0 : i32, i32, i32
  }
}

</mosaic_0001>

<bundles_post_ra>
// kernel: lap_loss.1
= control target key start
LH: loop header
LB: loop body
LE: loop exit
PB: predicated region body
PF: predicated region fallthrough
CT: control target
= control target key end

     0   :  { %s8079_s0 = inlined_call_operand.hbm [shape: f32[6,64,64], index: 0, kind: input, shape index: {}]   ;;  %s8080_s1 = inlined_call_operand.hbm [shape: f32[6,64,64], index: 1, kind: input, shape index: {}]   ;;  %s8081_s2 = inlined_call_operand.hbm [shape: f32[32,64], index: 2, kind: input, shape index: {}]   ;;  %s8082_s3 = inlined_call_operand.hbm [shape: f32[64,32], index: 3, kind: input, shape index: {}]   ;;  %s8083_s4 = inlined_call_operand.hbm [shape: f32[64,32], index: 4, kind: input, shape index: {}]   ;;  %s8084_s5 = inlined_call_operand.hbm [shape: f32[32,64], index: 5, kind: input, shape index: {}]   ;;  %s8085_s6 = inlined_call_operand.hbm [shape: f32[16,32], index: 6, kind: input, shape index: {}]   ;;  %s8086_s7 = inlined_call_operand.hbm [shape: f32[32,16], index: 7, kind: input, shape index: {}]   ;;  %s8087_s8 = inlined_call_operand.vmem [shape: f32[32,16], index: 8, kind: input, shape index: {}]   ;;  %s8088_s9 = inlined_call_operand.hbm [shape: f32[16,32], index: 9, kind: input, shape index: {}]   ;;  %s8089_s10 = inlined_call_operand.hbm [shape: f32[8,16], index: 10, kind: input, shape index: {}]   ;;  %s8090_s11 = inlined_call_operand.hbm [shape: f32[16,8], index: 11, kind: input, shape index: {}]   ;;  %s8091_s12 = inlined_call_operand.vmem [shape: f32[16,8], index: 12, kind: input, shape index: {}]   ;;  %s8092_s13 = inlined_call_operand.hbm [shape: f32[8,16], index: 13, kind: input, shape index: {}]   ;;  %s8093_s14 = inlined_call_operand.hbm [shape: f32[4,8], index: 14, kind: input, shape index: {}]   ;;  %s8094_s15 = inlined_call_operand.vmem [shape: f32[8,4], index: 15, kind: input, shape index: {}]   ;;  %s8095_s16 = inlined_call_operand.vmem [shape: f32[8,4], index: 16, kind: input, shape index: {}]   ;;  %s8096_s17 = inlined_call_operand.hbm [shape: f32[4,8], index: 17, kind: input, shape index: {}]   ;;  %s8097_s18 = inlined_call_operand.hbm [shape: f32[2,4], index: 18, kind: input, shape index: {}]   ;;  %s8098_s19 = inlined_call_operand.vmem [shape: f32[4,2], index: 19, kind: input, shape index: {}]   ;;  %s8099_s20 = inlined_call_operand.vmem [shape: f32[4,2], index: 20, kind: input, shape index: {}]   ;;  %s8100_s21 = inlined_call_operand.vmem [shape: f32[2,4], index: 21, kind: input, shape index: {}]   ;;  %s8101_s22 = inlined_call_operand.vmem [shape: f32[2,8,128], index: 22, kind: output, shape index: {}]  }
   0x1   :  { %8125 = sst [smem:[#allocation35_spill]] %s8079_s0 }
   0x2   :  { %8126 = sst [smem:[#allocation36_spill]] %s8080_s1 }
   0x3   :  { %8127 = sst [smem:[#allocation37_spill]] %s8081_s2 }
   0x4   :  { %8128 = sst [smem:[#allocation38_spill]] %s8082_s3 }
   0x5   :  { %8129 = sst [smem:[#allocation39_spill]] %s8083_s4 }
   0x6   :  { %8130 = sst [smem:[#allocation40_spill]] %s8084_s5 }
   0x7   :  { %8131 = sst [smem:[#allocation41_spill]] %s8085_s6 }
   0x8   :  { %8132 = sst [smem:[#allocation42_spill]] %s8086_s7 }
   0x9   :  { %8133 = sst [smem:[#allocation43_spill]] %s8087_s8 }
   0xa   :  { %8134 = sst [smem:[#allocation44_spill]] %s8088_s9 }
   0xb   :  { %8135 = sst [smem:[#allocation45_spill]] %s8089_s10 }
   0xc   :  { %8136 = sst [smem:[#allocation46_spill]] %s8090_s11 }
   0xd   :  { %8137 = sst [smem:[#allocation47_spill]] %s8091_s12 }
   0xe   :  { %8138 = sst [smem:[#allocation48_spill]] %s8094_s15 }
   0xf   :  { %8139 = sst [smem:[#allocation49_spill]] %s8095_s16 }
  0x10   :  { %8140 = sst [smem:[#allocation50_spill]] %s8098_s19 }
  0x11   :  { %8141 = sst [smem:[#allocation51_spill]] %s8099_s20 }
  0x12   :  { %8142 = sst [smem:[#allocation52_spill]] %s8100_s21 }
  0x13   :  { %8143 = sst [smem:[#allocation53_spill]] %s8101_s22 }
  0x14   :  { %27 = vsyncpa [#allocation3], 0 }
  0x15   :  { %29 = vsyncpa [#allocation3 + $0x1], 0 }
  0x16   :  { %30 = vsyncpa [#allocation5], 0 }
  0x17   :  { %32 = vsyncpa [#allocation5 + $0x1], 0 }
  0x18   :  { %33 = vsyncpa [#allocation8], 0 }
  0x19   :  { %34 = vsyncpa [#allocation11], 0 }
  0x1a   :  { %35 = vsyncpa [#allocation14], 0 }
  0x1b   :  { %36 = vsyncpa [#allocation17], 0 }
  0x1c   :  { %37 = vsyncpa [#allocation20], 0 }
  0x1d   :  { %38 = vsyncpa [#allocation23], 0  ;;  %s7009_s3 = smov 0   ;;  %s7011_s28 = smov 0  }
  0x1e   :  { %s7013_s29 = smov 0   ;;  %s7015_s30 = smov 0  }
  0x1f LB: > { %s6873_s4 = smov [#allocation6]   ;;  %s7030_s23 = sadd.s32 4294967295, %s6871_s30   ;;  %s6871_s30 = sphi %s7015_s30, %s8193_s30   ;;  %s6867_s29 = sphi %s7013_s29, %s8192_s29   ;;  %s6863_s28 = sphi %s7011_s28, %s8191_s28   ;;  %s6859_s3 = sphi %s7009_s3, %s8190_s3  }
  0x20   : > { %s559_s0 = sshll.u32 %s6873_s4, 4  ;;  %p5132_p0 = scmp.ge.s32.totalorder %s6871_s30, 1  ;;  %s7035_s0 = int_to_ptr.vmem [resolvable:$true] %s559_s0 }
  0x21   : > { %p8114_p1 = scmp.eq.s32.totalorder %s7030_s23, 0  ;;  %p547_p2 = scmp.lt.s32.totalorder %s6871_s30, 3 }
  0x22   : > { %s6874_s5 = smov [#allocation7]   ;;  %s6875_s25 = smov [#allocation10]  }
  0x23   : > { %p7037_p3 = pnand %p5132_p0, %p547_p2  ;;  %s572_s24 = sshll.u32 %s6874_s5, 4  ;;  %s7049_s24 = int_to_ptr.vmem [resolvable:$true] %s572_s24 }
  0x24   : > { %s598_s26 = sshll.u32 %s6875_s25, 4  ;;  %s8147_s4 = sld [smem:[#allocation37_spill]]  ;;  %s7051_s26 = int_to_ptr.vmem [resolvable:$true] %s598_s26 }
  0x25   : > { %s8144_s1 = scalar_select %p7037_p3, 1, 0 }
  0x26   : > { %p6256_p4 = pneg %p7037_p3 }
  0x27   : > { %8145 = sst [smem:[#allocation34_spill]] %s8144_s1 }
  0x28   : > { %p7045_p5 = pnand %p6256_p4, %p8114_p1 }
  0x2a   : > { %s6381_s22 = scalar_lea.hbm %s8147_s4, 512  ;;  %p7061_p7 = pneg %p7045_p5 }
  0x2b   : > { %p6382_p6 = scmp.ne.s32.totalorder %s8147_s4, %s6381_s22  ;;  %p6388_p10 = scmp.lt.u32.totalorder %s6381_s22, %s8147_s4 }
  0x2d   : > { %p6384_p8 = pnand %p7061_p7, %p6382_p6 }
  0x2f   : > { %p6385_p9 = pneg %p6384_p8 }
  0x31   : > { %p6390_p11 = pnand %p6388_p10, %p6385_p9 }
  0x33   : > { %6393 = shalt.err (!%p6390_p11)
}
  0x34   : > { %s6394_s20 = scalar_lea.vmem %s7035_s0, 512  ;;  %p6402_p2 = scmp.lt.s32.totalorder %s7035_s0, %s7035_s0 }
  0x35   : > { %p6395_p12 = scmp.ne.s32.totalorder %s7035_s0, %s6394_s20  ;;  %p6403_p4 = scmp.lt.s32.totalorder %s6394_s20, %s6394_s20 }
  0x37   : > { %p6397_p13 = pnand %p6395_p12, %p7061_p7  ;;  %p6404_p6 = por %p6403_p4, %p6402_p2 }
  0x39   : > { %p6398_p0 = pneg %p6397_p13 }
  0x3b   : > { %p6405_p8 = pnand %p6404_p6, %p6398_p0 }
  0x3d   : > { %6408 = shalt.err (!%p6405_p8)
}
  0x3e   : > { %s8116_s21 = smov 128   ;;  %s8120_s19 = smov 8  }
  0x3f   : > { %6259 = dma.hbm_to_vmem [thread:$0]  (!%p7045_p5), %s8147_s4, 512, %s7035_s0, [#allocation5], %s8116_s21, %s8116_s21, %s8120_s19  }
  0x40   : > { %s8149_s16 = sld [smem:[#allocation38_spill]] }
  0x46   : > { %s6409_s20 = scalar_lea.hbm %s8149_s16, 1024 }
  0x47   : > { %p6410_p9 = scmp.ne.s32.totalorder %s8149_s16, %s6409_s20  ;;  %p6416_p12 = scmp.lt.u32.totalorder %s6409_s20, %s8149_s16 }
  0x49   : > { %p6412_p10 = pnand %p6410_p9, %p7061_p7 }
  0x4b   : > { %p6413_p11 = pneg %p6412_p10 }
  0x4d   : > { %p6418_p13 = pnand %p6416_p12, %p6413_p11 }
  0x4f   : > { %6421 = shalt.err (!%p6418_p13)
}
  0x50   : > { %s6422_s0 = scalar_lea.vmem %s7049_s24, 1024  ;;  %p6430_p6 = scmp.lt.s32.totalorder %s7049_s24, %s7049_s24 }
  0x51   : > { %p6423_p0 = scmp.ne.s32.totalorder %s7049_s24, %s6422_s0  ;;  %p6431_p8 = scmp.lt.s32.totalorder %s6422_s0, %s6422_s0 }
  0x53   : > { %p6425_p2 = pnand %p6423_p0, %p7061_p7  ;;  %p6432_p9 = por %p6431_p8, %p6430_p6 }
  0x55   : > { %p6426_p4 = pneg %p6425_p2 }
  0x57   : > { %p6433_p10 = pnand %p6432_p9, %p6426_p4 }
  0x59   : > { %6436 = shalt.err (!%p6433_p10)
}
  0x5a   : > { %6262 = dma.hbm_to_vmem [thread:$0]  (!%p7045_p5), %s8149_s16, 1024, %s7049_s24, [#allocation8], %s8116_s21, %s8116_s21, %s8120_s19  }
  0x5b   : > { %s8150_s22 = sld [smem:[#allocation40_spill]] }
  0x61   : > { %s6437_s2 = scalar_lea.hbm %s8150_s22, 512 }
  0x62   : > { %p6438_p11 = scmp.ne.s32.totalorder %s8150_s22, %s6437_s2  ;;  %p6444_p0 = scmp.lt.u32.totalorder %s6437_s2, %s8150_s22 }
  0x64   : > { %p6440_p12 = pnand %p6438_p11, %p7061_p7 }
  0x66   : > { %p6441_p13 = pneg %p6440_p12 }
  0x68   : > { %p6446_p2 = pnand %p6444_p0, %p6441_p13 }
  0x6a   : > { %6449 = shalt.err (!%p6446_p2)
}
  0x6b   : > { %s6450_s24 = scalar_lea.vmem %s7051_s26, 512  ;;  %p6458_p9 = scmp.lt.s32.totalorder %s7051_s26, %s7051_s26 }
  0x6c   : > { %p6451_p4 = scmp.ne.s32.totalorder %s7051_s26, %s6450_s24  ;;  %p6459_p10 = scmp.lt.s32.totalorder %s6450_s24, %s6450_s24 }
  0x6e   : > { %p6453_p6 = pnand %p6451_p4, %p7061_p7  ;;  %p6460_p11 = por %p6459_p10, %p6458_p9 }
  0x70   : > { %p6454_p8 = pneg %p6453_p6 }
  0x72   : > { %p6461_p12 = pnand %p6460_p11, %p6454_p8 }
  0x74   : > { %6464 = shalt.err (!%p6461_p12)
}
  0x75   : > { %6268 = dma.hbm_to_vmem [thread:$0]  (!%p7045_p5), %s8150_s22, 512, %s7051_s26, [#allocation11], %s8116_s21, %s8116_s21, %s8120_s19  }
  0x76   : > { %s6878_s15 = smov [#allocation13]   ;;  %s6879_s2 = smov [#allocation16]  }
  0x77   : > { %s624_s1 = sshll.u32 %s6878_s15, 4  ;;  %s654_s27 = sshll.u32 %s6879_s2, 4  ;;  %s625_s1 = int_to_ptr.vmem [resolvable:$true] %s624_s1  ;;  %s655_s27 = int_to_ptr.vmem [resolvable:$true] %s654_s27 }
  0x78   : > { %s8151_s7 = sld [smem:[#allocation42_spill]] }
  0x7e   : > { %s6465_s0 = scalar_lea.hbm %s8151_s7, 512 }
  0x7f   : > { %p6466_p13 = scmp.ne.s32.totalorder %s8151_s7, %s6465_s0  ;;  %p6472_p4 = scmp.lt.u32.totalorder %s6465_s0, %s8151_s7 }
  0x81   : > { %p6468_p0 = pnand %p6466_p13, %p7061_p7 }
  0x83   : > { %p6469_p2 = pneg %p6468_p0 }
  0x85   : > { %p6474_p6 = pnand %p6472_p4, %p6469_p2 }
  0x87   : > { %6477 = shalt.err (!%p6474_p6)
}
  0x88   : > { %s6478_s26 = scalar_lea.vmem %s625_s1, 512  ;;  %p6486_p11 = scmp.lt.s32.totalorder %s625_s1, %s625_s1 }
  0x89   : > { %p6479_p8 = scmp.ne.s32.totalorder %s625_s1, %s6478_s26  ;;  %p6487_p12 = scmp.lt.s32.totalorder %s6478_s26, %s6478_s26 }
  0x8b   : > { %p6481_p9 = pnand %p6479_p8, %p7061_p7  ;;  %p6488_p1 = por %p6487_p12, %p6486_p11 }
  0x8d   : > { %p6482_p10 = pneg %p6481_p9 }
  0x8f   : > { %p6489_p3 = pnand %p6488_p1, %p6482_p10 }
  0x91   : > { %6492 = shalt.err (!%p6489_p3)
}
  0x92   : > { %6274 = dma.hbm_to_vmem [thread:$0]  (!%p7045_p5), %s8151_s7, 512, %s625_s1, [#allocation14], %s8116_s21, %s8116_s21, %s8120_s19  }
  0x93   : > { %s8152_s10 = sld [smem:[#allocation45_spill]] }
  0x99   : > { %s6493_s2 = scalar_lea.hbm %s8152_s10, 128 }
  0x9a   : > { %p6494_p1 = scmp.ne.s32.totalorder %s8152_s10, %s6493_s2  ;;  %p6500_p0 = scmp.lt.u32.totalorder %s6493_s2, %s8152_s10 }
  0x9c   : > { %p6496_p3 = pnand %p6494_p1, %p7061_p7 }
  0x9e   : > { %p6497_p13 = pneg %p6496_p3 }
  0xa0   : > { %p6502_p2 = pnand %p6500_p0, %p6497_p13 }
  0xa2   : > { %6505 = shalt.err (!%p6502_p2)
}
  0xa3   : > { %s6506_s8 = scalar_lea.vmem %s655_s27, 128  ;;  %p6514_p9 = scmp.lt.s32.totalorder %s655_s27, %s655_s27 }
  0xa4   : > { %p6507_p4 = scmp.ne.s32.totalorder %s655_s27, %s6506_s8  ;;  %p6515_p10 = scmp.lt.s32.totalorder %s6506_s8, %s6506_s8 }
  0xa6   : > { %p6509_p6 = pnand %p6507_p4, %p7061_p7  ;;  %p6516_p11 = por %p6515_p10, %p6514_p9 }
  0xa8   : > { %p6510_p8 = pneg %p6509_p6 }
  0xaa   : > { %p6517_p12 = pnand %p6516_p11, %p6510_p8 }
  0xac   : > { %6520 = shalt.err (!%p6517_p12)
}
  0xad   : > { %6280 = dma.hbm_to_vmem [thread:$0]  (!%p7045_p5), %s8152_s10, 128, %s655_s27, [#allocation17]  }
  0xae   : > { %s6880_s16 = smov [#allocation19]   ;;  %s6881_s12 = smov [#allocation22]  }
  0xaf   : > { %s681_s4 = sshll.u32 %s6880_s16, 4  ;;  %s709_s15 = sshll.u32 %s6881_s12, 4  ;;  %s682_s4 = int_to_ptr.vmem [resolvable:$true] %s681_s4  ;;  %s710_s15 = int_to_ptr.vmem [resolvable:$true] %s709_s15 }
  0xb0   : > { %s6521_s20 = scalar_lea.hbm %s8092_s13, 128 }
  0xb1   : > { %p6522_p1 = scmp.ne.s32.totalorder %s8092_s13, %s6521_s20  ;;  %p6528_p0 = scmp.lt.u32.totalorder %s6521_s20, %s8092_s13 }
  0xb3   : > { %p6524_p3 = pnand %p6522_p1, %p7061_p7 }
  0xb5   : > { %p6525_p13 = pneg %p6524_p3 }
  0xb7   : > { %p6530_p2 = pnand %p6528_p0, %p6525_p13 }
  0xb9   : > { %6533 = shalt.err (!%p6530_p2)
}
  0xba   : > { %s6534_s27 = scalar_lea.vmem %s682_s4, 128  ;;  %p6542_p9 = scmp.lt.s32.totalorder %s682_s4, %s682_s4 }
  0xbb   : > { %p6535_p4 = scmp.ne.s32.totalorder %s682_s4, %s6534_s27  ;;  %p6543_p10 = scmp.lt.s32.totalorder %s6534_s27, %s6534_s27 }
  0xbd   : > { %p6537_p6 = pnand %p6535_p4, %p7061_p7  ;;  %p6544_p11 = por %p6543_p10, %p6542_p9 }
  0xbf   : > { %p6538_p8 = pneg %p6537_p6 }
  0xc1   : > { %p6545_p12 = pnand %p6544_p11, %p6538_p8 }
  0xc3   : > { %6548 = shalt.err (!%p6545_p12)
}
  0xc4   : > { %6286 = dma.hbm_to_vmem [thread:$0]  (!%p7045_p5), %s8092_s13, 128, %s682_s4, [#allocation20]  }
  0xc5   : > { %s6549_s25 = scalar_lea.hbm %s8096_s17, 64 }
  0xc6   : > { %p6550_p1 = scmp.ne.s32.totalorder %s8096_s17, %s6549_s25  ;;  %p6556_p0 = scmp.lt.u32.totalorder %s6549_s25, %s8096_s17 }
  0xc8   : > { %p6552_p3 = pnand %p6550_p1, %p7061_p7 }
  0xca   : > { %p6553_p13 = pneg %p6552_p3 }
  0xcc   : > { %p6558_p2 = pnand %p6556_p0, %p6553_p13 }
  0xce   : > { %6561 = shalt.err (!%p6558_p2)
}
  0xcf   : > { %s6562_s1 = scalar_lea.vmem %s710_s15, 64  ;;  %p6570_p9 = scmp.lt.s32.totalorder %s710_s15, %s710_s15 }
  0xd0   : > { %p6563_p4 = scmp.ne.s32.totalorder %s710_s15, %s6562_s1  ;;  %p6571_p10 = scmp.lt.s32.totalorder %s6562_s1, %s6562_s1 }
  0xd2   : > { %p6565_p6 = pnand %p6563_p4, %p7061_p7  ;;  %p6572_p11 = por %p6571_p10, %p6570_p9 }
  0xd4   : > { %p6566_p8 = pneg %p6565_p6 }
  0xd6   : > { %p6573_p12 = pnand %p6572_p11, %p6566_p8 }
  0xd8   : > { %6576 = shalt.err (!%p6573_p12)
}
  0xd9   : > { %6292 = dma.hbm_to_vmem [thread:$0]  (!%p7045_p5), %s8096_s17, 64, %s710_s15, [#allocation23]  }
  0xda   : > { %s6882_s26 = smov [#allocation9]   ;;  %s6883_s12 = smov [#allocation12]  }
  0xdb   : > { %s585_s16 = sshll.u32 %s6882_s26, 4  ;;  %s611_s2 = sshll.u32 %s6883_s12, 4  ;;  %s586_s16 = int_to_ptr.vmem [resolvable:$true] %s585_s16  ;;  %s612_s2 = int_to_ptr.vmem [resolvable:$true] %s611_s2 }
  0xdc   : > { %s8153_s0 = sld [smem:[#allocation39_spill]] }
  0xe2   : > { %s6577_s24 = scalar_lea.hbm %s8153_s0, 1024 }
  0xe3   : > { %p6578_p1 = scmp.ne.s32.totalorder %s8153_s0, %s6577_s24  ;;  %p6584_p0 = scmp.lt.u32.totalorder %s6577_s24, %s8153_s0 }
  0xe5   : > { %p6580_p3 = pnand %p6578_p1, %p7061_p7 }
  0xe7   : > { %p6581_p13 = pneg %p6580_p3 }
  0xe9   : > { %p6586_p2 = pnand %p6584_p0, %p6581_p13 }
  0xeb   : > { %6589 = shalt.err (!%p6586_p2)
}
  0xec   : > { %s6590_s15 = scalar_lea.vmem %s586_s16, 1024  ;;  %p6598_p9 = scmp.lt.s32.totalorder %s586_s16, %s586_s16 }
  0xed   : > { %p6591_p4 = scmp.ne.s32.totalorder %s586_s16, %s6590_s15  ;;  %p6599_p10 = scmp.lt.s32.totalorder %s6590_s15, %s6590_s15 }
  0xef   : > { %p6593_p6 = pnand %p6591_p4, %p7061_p7  ;;  %p6600_p11 = por %p6599_p10, %p6598_p9 }
  0xf1   : > { %p6594_p8 = pneg %p6593_p6 }
  0xf3   : > { %p6601_p12 = pnand %p6600_p11, %p6594_p8 }
  0xf5   : > { %6604 = shalt.err (!%p6601_p12)
}
  0xf6   : > { %s8154_s27 = smov 128   ;;  %s8155_s20 = sld [smem:[#allocation41_spill]] }
  0xf7   : > { %6265 = dma.hbm_to_vmem [thread:$0]  (!%p7045_p5), %s8153_s0, 1024, %s586_s16, [#allocation8], %s8154_s27, %s8154_s27, %s8120_s19  }
  0xfc   : > { %s6605_s24 = scalar_lea.hbm %s8155_s20, 256 }
  0xfd   : > { %p6606_p1 = scmp.ne.s32.totalorder %s8155_s20, %s6605_s24  ;;  %p6612_p0 = scmp.lt.u32.totalorder %s6605_s24, %s8155_s20 }
  0xff   : > { %p6608_p3 = pnand %p6606_p1, %p7061_p7 }
 0x101   : > { %p6609_p13 = pneg %p6608_p3 }
 0x103   : > { %p6614_p2 = pnand %p6612_p0, %p6609_p13 }
 0x105   : > { %6617 = shalt.err (!%p6614_p2)
}
 0x106   : > { %s6618_s21 = scalar_lea.vmem %s612_s2, 256  ;;  %p6626_p9 = scmp.lt.s32.totalorder %s612_s2, %s612_s2 }
 0x107   : > { %p6619_p4 = scmp.ne.s32.totalorder %s612_s2, %s6618_s21  ;;  %p6627_p10 = scmp.lt.s32.totalorder %s6618_s21, %s6618_s21 }
 0x109   : > { %p6621_p6 = pnand %p6619_p4, %p7061_p7  ;;  %p6628_p11 = por %p6627_p10, %p6626_p9 }
 0x10b   : > { %p6622_p8 = pneg %p6621_p6 }
 0x10d   : > { %p6629_p12 = pnand %p6628_p11, %p6622_p8 }
 0x10f   : > { %6632 = shalt.err (!%p6629_p12)
}
 0x110   : > { %6271 = dma.hbm_to_vmem [thread:$0]  (!%p7045_p5), %s8155_s20, 256, %s612_s2, [#allocation11], %s8154_s27, %s8154_s27, %s8120_s19  }
 0x111   : > { %s6884_s12 = smov [#allocation15]   ;;  %s6885_s24 = smov [#allocation18]  }
 0x112   : > { %s640_s25 = sshll.u32 %s6884_s12, 4  ;;  %s664_s8 = sshll.u32 %s6885_s24, 4  ;;  %s641_s25 = int_to_ptr.vmem [resolvable:$true] %s640_s25  ;;  %s665_s8 = int_to_ptr.vmem [resolvable:$true] %s664_s8 }
 0x113   : > { %s8156_s9 = sld [smem:[#allocation44_spill]] }
 0x119   : > { %s6633_s15 = scalar_lea.hbm %s8156_s9, 256 }
 0x11a   : > { %p6634_p1 = scmp.ne.s32.totalorder %s8156_s9, %s6633_s15  ;;  %p6640_p0 = scmp.lt.u32.totalorder %s6633_s15, %s8156_s9 }
 0x11c   : > { %p6636_p3 = pnand %p6634_p1, %p7061_p7 }
 0x11e   : > { %p6637_p13 = pneg %p6636_p3 }
 0x120   : > { %p6642_p2 = pnand %p6640_p0, %p6637_p13 }
 0x122   : > { %6645 = shalt.err (!%p6642_p2)
}
 0x123   : > { %s6646_s2 = scalar_lea.vmem %s641_s25, 256  ;;  %p6654_p9 = scmp.lt.s32.totalorder %s641_s25, %s641_s25 }
 0x124   : > { %p6647_p4 = scmp.ne.s32.totalorder %s641_s25, %s6646_s2  ;;  %p6655_p10 = scmp.lt.s32.totalorder %s6646_s2, %s6646_s2 }
 0x126   : > { %p6649_p6 = pnand %p6647_p4, %p7061_p7  ;;  %p6656_p11 = por %p6655_p10, %p6654_p9 }
 0x128   : > { %p6650_p8 = pneg %p6649_p6 }
 0x12a   : > { %p6657_p12 = pnand %p6656_p11, %p6650_p8 }
 0x12c   : > { %6660 = shalt.err (!%p6657_p12)
}
 0x12d   : > { %6277 = dma.hbm_to_vmem [thread:$0]  (!%p7045_p5), %s8156_s9, 256, %s641_s25, [#allocation14], %s8154_s27, %s8154_s27, %s8120_s19  }
 0x12e   : > { %s8157_s11 = sld [smem:[#allocation46_spill]] }
 0x134   : > { %s6661_s24 = scalar_lea.hbm %s8157_s11, 256 }
 0x135   : > { %p6662_p1 = scmp.ne.s32.totalorder %s8157_s11, %s6661_s24  ;;  %p6668_p0 = scmp.lt.u32.totalorder %s6661_s24, %s8157_s11 }
 0x137   : > { %p6664_p3 = pnand %p6662_p1, %p7061_p7 }
 0x139   : > { %p6665_p13 = pneg %p6664_p3 }
 0x13b   : > { %p6670_p2 = pnand %p6668_p0, %p6665_p13 }
 0x13d   : > { %6673 = shalt.err (!%p6670_p2)
}
 0x13e   : > { %s6674_s16 = scalar_lea.vmem %s665_s8, 256  ;;  %p6682_p9 = scmp.lt.s32.totalorder %s665_s8, %s665_s8 }
 0x13f   : > { %p6675_p4 = scmp.ne.s32.totalorder %s665_s8, %s6674_s16  ;;  %p6683_p10 = scmp.lt.s32.totalorder %s6674_s16, %s6674_s16 }
 0x141   : > { %p6677_p6 = pnand %p6675_p4, %p7061_p7  ;;  %p6684_p11 = por %p6683_p10, %p6682_p9 }
 0x143   : > { %p6678_p8 = pneg %p6677_p6 }
 0x145   : > { %p6685_p12 = pnand %p6684_p11, %p6678_p8 }
 0x147   : > { %6688 = shalt.err (!%p6685_p12)
}
 0x148   : > { %6283 = dma.hbm_to_vmem [thread:$0]  (!%p7045_p5), %s8157_s11, 256, %s665_s8, [#allocation17], %s8154_s27, %s8154_s27, %s8120_s19  }
 0x149   : > { %s6886_s7 = smov [#allocation21]   ;;  %s6887_s26 = smov [#allocation24]  }
 0x14a   : > { %s692_s0 = sshll.u32 %s6886_s7, 4  ;;  %s720_s12 = sshll.u32 %s6887_s26, 4  ;;  %s693_s0 = int_to_ptr.vmem [resolvable:$true] %s692_s0  ;;  %s721_s12 = int_to_ptr.vmem [resolvable:$true] %s720_s12 }
 0x14b   : > { %s6689_s4 = scalar_lea.hbm %s8093_s14, 64 }
 0x14c   : > { %p6690_p1 = scmp.ne.s32.totalorder %s8093_s14, %s6689_s4  ;;  %p6696_p0 = scmp.lt.u32.totalorder %s6689_s4, %s8093_s14 }
 0x14e   : > { %p6692_p3 = pnand %p6690_p1, %p7061_p7 }
 0x150   : > { %p6693_p13 = pneg %p6692_p3 }
 0x152   : > { %p6698_p2 = pnand %p6696_p0, %p6693_p13 }
 0x154   : > { %6701 = shalt.err (!%p6698_p2)
}
 0x155   : > { %s6702_s8 = scalar_lea.vmem %s693_s0, 64  ;;  %p6710_p9 = scmp.lt.s32.totalorder %s693_s0, %s693_s0 }
 0x156   : > { %p6703_p4 = scmp.ne.s32.totalorder %s693_s0, %s6702_s8  ;;  %p6711_p10 = scmp.lt.s32.totalorder %s6702_s8, %s6702_s8 }
 0x158   : > { %p6705_p6 = pnand %p6703_p4, %p7061_p7  ;;  %p6712_p11 = por %p6711_p10, %p6710_p9 }
 0x15a   : > { %p6706_p8 = pneg %p6705_p6 }
 0x15c   : > { %p6713_p12 = pnand %p6712_p11, %p6706_p8 }
 0x15e   : > { %6716 = shalt.err (!%p6713_p12)
}
 0x15f   : > { %6289 = dma.hbm_to_vmem [thread:$0]  (!%p7045_p5), %s8093_s14, 64, %s693_s0, [#allocation20]  }
 0x160   : > { %s6717_s1 = scalar_lea.hbm %s8097_s18, 32 }
 0x161   : > { %p6718_p1 = scmp.ne.s32.totalorder %s8097_s18, %s6717_s1  ;;  %p6724_p0 = scmp.lt.u32.totalorder %s6717_s1, %s8097_s18 }
 0x163   : > { %p6720_p3 = pnand %p6718_p1, %p7061_p7 }
 0x165   : > { %p6721_p13 = pneg %p6720_p3 }
 0x167   : > { %p6726_p2 = pnand %p6724_p0, %p6721_p13 }
 0x169   : > { %6729 = shalt.err (!%p6726_p2)
}
 0x16a   : > { %s6730_s25 = scalar_lea.vmem %s721_s12, 32  ;;  %p6738_p9 = scmp.lt.s32.totalorder %s721_s12, %s721_s12 }
 0x16b   : > { %p6731_p4 = scmp.ne.s32.totalorder %s721_s12, %s6730_s25  ;;  %p6739_p10 = scmp.lt.s32.totalorder %s6730_s25, %s6730_s25 }
 0x16d   : > { %p6733_p6 = pnand %p6731_p4, %p7061_p7  ;;  %p6740_p11 = por %p6739_p10, %p6738_p9 }
 0x16f   : > { %p6734_p8 = pneg %p6733_p6 }
 0x171   : > { %p6741_p12 = pnand %p6740_p11, %p6734_p8 }
 0x173   : > { %6744 = shalt.err (!%p6741_p12)
}
 0x174   : > { %6295 = dma.hbm_to_vmem [thread:$0]  (!%p7045_p5), %s8097_s18, 32, %s721_s12, [#allocation23]  }
 0x175   : > { %s7333_s5 = sadd.s32 1, %s6871_s30   ;;  %s51_s2 = sadd.s32 1, %s6867_s29 }
 0x176   : > { %s48_s6 = ssub.s32 %s6871_s30, %s7333_s5  ;;  %p58_p1 = scmp.ne.s32.totalorder %s6867_s29, %s6863_s28 }
 0x177   : > { %p49_p7 = scmp.eq.s32.totalorder %s48_s6, 0  ;;  %p59_p3 = scmp.eq.s32.totalorder %s6871_s30, 0 }
 0x178   : > { %p64_p13 = scmp.ne.s32.totalorder %s6863_s28, %s6859_s3  ;;  %p8158_p2 = scmp.eq.s32.totalorder %s7030_s23, 0 }
 0x179   : > { %s7344_s7 = scalar_select %p49_p7, %s6867_s29, %s51_s2  }
 0x17a   : > { %p60_p0 = por %p59_p3, %p58_p1  ;;  %p7348_p4 = por %p8158_p2, %p64_p13 }
 0x17b   : > { %p6316_p5 = scmp.lt.s32.totalorder %s6871_s30, 2  ;;  %s740_s12 = sand.u32 1, %s6867_s29  }
 0x17c   : > { %s7354_s24 = smul.u32 192, %s740_s12  ;;  %s8161_s16 = sld [smem:[#allocation35_spill]] }
 0x17d   : > { %s8119_s1 = smul.u32 3072, %s6871_s30  ;;  %p7357_p6 = pnand %p6316_p5, %p60_p0 }
 0x17e   : > { %s744_s0 = scalar_lea.vmem [#allocation2], %s7354_s24  ;;  %s7372_s6 = scalar_lea.sflag [#allocation3], %s740_s12 }
 0x17f   : > { %s752_s8 = sshll.u32 %s744_s0, 4  ;;  %p6747_p9 = pneg %p7357_p6  ;;  %s7370_s8 = int_to_ptr.vmem [resolvable:$true] %s752_s8 }
 0x182   : > { %s7367_s25 = scalar_lea.hbm %s8161_s16, %s8119_s1  ;;  %s6750_s3 = scalar_lea.hbm %s8161_s16, 6144 }
 0x183   : > { %s6745_s2 = scalar_lea.hbm %s7367_s25, 3072  ;;  %p6751_p12 = scmp.lt.u32.totalorder %s7367_s25, %s8161_s16 }
 0x184   : > { %p6746_p8 = scmp.ne.s32.totalorder %s7367_s25, %s6745_s2  ;;  %p6752_p7 = scmp.lt.u32.totalorder %s6750_s3, %s6745_s2 }
 0x185   : > { %p6754_p3 = scmp.lt.u32.totalorder %s6745_s2, %s7367_s25 }
 0x186   : > { %p6748_p10 = pnand %p6747_p9, %p6746_p8  ;;  %p6753_p1 = por %p6752_p7, %p6751_p12 }
 0x188   : > { %p6749_p11 = pneg %p6748_p10  ;;  %p6755_p13 = por %p6754_p3, %p6753_p1 }
 0x18a   : > { %p6756_p0 = pnand %p6755_p13, %p6749_p11 }
 0x18c   : > { %6759 = shalt.err (!%p6756_p0)
}
 0x18d   : > { %s6760_s12 = scalar_lea.vmem %s7370_s8, 3072  ;;  %s6888_s0 = smov [#allocation2]  }
 0x18e   : > { %p6761_p2 = scmp.ne.s32.totalorder %s7370_s8, %s6760_s12  ;;  %s6765_s15 = sshll.u32 %s6888_s0, 4  ;;  %s6766_s15 = int_to_ptr.vmem [resolvable:$false] %s6765_s15 }
 0x18f   : > { %s6767_s19 = scalar_lea.vmem %s6766_s15, 6144  ;;  %p6768_p10 = scmp.lt.s32.totalorder %s7370_s8, %s6766_s15 }
 0x190   : > { %p6763_p5 = pnand %p6761_p2, %p6747_p9  ;;  %p6769_p12 = scmp.lt.s32.totalorder %s6767_s19, %s6760_s12 }
 0x192   : > { %p6764_p8 = pneg %p6763_p5  ;;  %p6770_p7 = por %p6769_p12, %p6768_p10 }
 0x194   : > { %p6771_p1 = pnand %p6770_p7, %p6764_p8 }
 0x196   : > { %6774 = shalt.err (!%p6771_p1)
}
 0x197   : > { %s8162_s1 = smov 8   ;;  %s8163_s3 = smul.u32 3072, %s6871_s30 }
 0x198   : > { %6299 = dma.hbm_to_vmem [thread:$0]  (!%p7357_p6), %s7367_s25, 3072, %s7370_s8, %s7372_s6, %s8154_s27, %s8154_s27, %s8162_s1  }
 0x199   : > { %s8164_s12 = sld [smem:[#allocation36_spill]]  ;;  %s766_s15 = scalar_lea.vmem [#allocation4], %s7354_s24 }
 0x19a   : > { %s774_s19 = sshll.u32 %s766_s15, 4  ;;  %s8165_s9 = sand.u32 1, %s6871_s30   ;;  %s7411_s19 = int_to_ptr.vmem [resolvable:$true] %s774_s19 }
 0x19b   : > { %s7415_s10 = scalar_lea.sflag [#allocation5], %s8165_s9 }
 0x19f   : > { %s7408_s0 = scalar_lea.hbm %s8164_s12, %s8163_s3  ;;  %s6780_s6 = scalar_lea.hbm %s8164_s12, 6144 }
 0x1a0   : > { %s6775_s11 = scalar_lea.hbm %s7408_s0, 3072  ;;  %p6781_p0 = scmp.lt.u32.totalorder %s7408_s0, %s8164_s12 }
 0x1a1   : > { %p6776_p11 = scmp.ne.s32.totalorder %s7408_s0, %s6775_s11  ;;  %p6782_p2 = scmp.lt.u32.totalorder %s6780_s6, %s6775_s11 }
 0x1a2   : > { %p6784_p8 = scmp.lt.u32.totalorder %s6775_s11, %s7408_s0 }
 0x1a3   : > { %p6778_p3 = pnand %p6776_p11, %p6747_p9  ;;  %p6783_p5 = por %p6782_p2, %p6781_p0 }
 0x1a5   : > { %p6779_p13 = pneg %p6778_p3  ;;  %p6785_p10 = por %p6784_p8, %p6783_p5 }
 0x1a7   : > { %p6786_p12 = pnand %p6785_p10, %p6779_p13 }
 0x1a9   : > { %6789 = shalt.err (!%p6786_p12)
}
 0x1aa   : > { %s6790_s9 = scalar_lea.vmem %s7411_s19, 3072  ;;  %s6889_s30 = smov [#allocation4]  }
 0x1ab   : > { %p6791_p7 = scmp.ne.s32.totalorder %s7411_s19, %s6790_s9  ;;  %s6795_s24 = sshll.u32 %s6889_s30, 4  ;;  %s6796_s24 = int_to_ptr.vmem [resolvable:$false] %s6795_s24 }
 0x1ac   : > { %s6797_s21 = scalar_lea.vmem %s6796_s24, 6144  ;;  %p6798_p3 = scmp.lt.s32.totalorder %s7411_s19, %s6796_s24 }
 0x1ad   : > { %p6793_p1 = pnand %p6791_p7, %p6747_p9  ;;  %p6799_p0 = scmp.lt.s32.totalorder %s6797_s21, %s6790_s9 }
 0x1af   : > { %p6794_p11 = pneg %p6793_p1  ;;  %p6800_p2 = por %p6799_p0, %p6798_p3 }
 0x1b1   : > { %p6801_p5 = pnand %p6800_p2, %p6794_p11 }
 0x1b3   : > { %6804 = shalt.err (!%p6801_p5)
}
 0x1b4   : > { %6302 = dma.hbm_to_vmem [thread:$0]  (!%p7357_p6), %s7408_s0, 3072, %s7411_s19, %s7415_s10, %s8154_s27, %s8154_s27, %s8162_s1  }
 0x1b5   : > { %s8166_s11 = sld [smem:[#allocation34_spill]] }
 0x1bb   : > { %p8167_p9 = scmp.ne.s32.totalorder %s8166_s11, 0 }
 0x1bc   : > { %s788_s15 = sand.u32 (!%p8167_p9), 1, %s6863_s28  }
 0x1bd   : > { %786 = sbr.rel (%p8167_p9) target bundleno = 4047 (0xfcf), region = 108  ;;  %s789_s8 = scalar_lea.sflag (!%p8167_p9), [#allocation3], %s788_s15 }
 0x1be   : > { %s6189_s25 = smul.u32 (!%p8167_p9), 192, %s788_s15 }
 0x1c0   : > { %s7447_s6 = scalar_lea.vmem (!%p8167_p9), [#allocation2], %s6189_s25 }
 0x1c4   : > { %6822 = dma.done.wait (%p7348_p4), %s789_s8, 3072  }
 0x1c5   : > { %6824 = vsyncadd (%p7348_p4), %s789_s8, 4294964224  ;;  %s797_s4 = sand.u32 1, %s7030_s23   ;;  %s7454_s10 = scalar_lea.vmem [#allocation4], %s6189_s25 }
 0x1c6   : > { %s798_s3 = scalar_lea.sflag [#allocation5], %s797_s4 }
 0x1c7   : > { %6826 = dma.done.wait (%p7348_p4), %s798_s3, 3072  }
 0x1c8   : > { %6828 = vsyncadd (%p7348_p4), %s798_s3, 4294964224  ;;  %p8168_p6 = scmp.eq.s32.totalorder %s7030_s23, 0 }
 0x1ca   : > { %6830 = dma.done.wait (%p8168_p6), [#allocation5], 512   ;;  %p8169_p13 = pmov %p8168_p6 }
 0x1cb   : > { %p8170_p8 = pmov %p8168_p6 }
 0x1cc   : > { %6832 = vsyncadd (%p8169_p13), [#allocation5], 4294966784 }
 0x1cd   : > { %6834 = dma.done.wait (%p8170_p8), [#allocation8], 2048   ;;  %p8171_p10 = pmov %p8168_p6 }
 0x1ce   : > { %p8172_p12 = pmov %p8168_p6 }
 0x1cf   : > { %6836 = vsyncadd (%p8171_p10), [#allocation8], 4294965248 }
 0x1d0   : > { %6838 = dma.done.wait (%p8172_p12), [#allocation11], 768   ;;  %p8173_p7 = pmov %p8168_p6 }
 0x1d1   : > { %p8174_p4 = pmov %p8168_p6 }
 0x1d2   : > { %6840 = vsyncadd (%p8173_p7), [#allocation11], 4294966528 }
 0x1d3   : > { %6842 = dma.done.wait (%p8174_p4), [#allocation14], 768   ;;  %p8175_p1 = pmov %p8174_p4 }
 0x1d5   : > { %6844 = vsyncadd (%p8175_p1), [#allocation14], 4294966528  ;;  %p8176_p11 = pmov %p8175_p1 }
 0x1d6   : > { %p8177_p3 = pmov %p8175_p1 }
 0x1d7   : > { %6846 = dma.done.wait (%p8176_p11), [#allocation17], 384  }
 0x1d8   : > { %6848 = vsyncadd (%p8177_p3), [#allocation17], 4294966912  ;;  %p8178_p0 = pmov %p8175_p1 }
 0x1da   : > { %6850 = dma.done.wait (%p8178_p0), [#allocation20], 192   ;;  %p8179_p2 = pmov %p8178_p0 }
 0x1db   : > { %p8180_p5 = pmov %p8178_p0 }
 0x1dc   : > { %6852 = vsyncadd (%p8179_p2), [#allocation20], 4294967104 }
 0x1dd   : > { %6854 = dma.done.wait (%p8180_p5), [#allocation23], 96   ;;  %p8181_p9 = pmov %p8178_p0 }
 0x1de   : > { %v1000_v0 = vld [vmem:[#allocation7] sm:$0xff]  ;;  %v1001_v1 = vld [vmem:[#allocation7 + $0x8] sm:$0xff]  ;;  %v1002_v2 = vld [vmem:[#allocation7 + $0x10] sm:$0xff]  ;;  %vm1020_vm0 = vcmask 523264   ;;  %vm1545_vm1 = vcmask 261120   ;;  %vm2520_vm2 = vcmask 130048  }
 0x1df   : > { %6856 = vsyncadd (%p8181_p9), [#allocation23], 4294967200  ;;  %v6030_v3 = vpack.c.bf16 %v1001_v1, %v1000_v0  ;;  %v1003_v4 = vld [vmem:[#allocation7 + $0x18] sm:$0xff]  ;;  %v1004_v6 = vld [vmem:[#allocation7 + $0x20] sm:$0xff]  ;;  %s8182_s1 = sld [smem:[#allocation43_spill]]  ;;  %vm6891_vm3 = vmmov 0  }
 0x1e0   : > { %v6034_v5 = vpack.c.bf16 %v1003_v4, %v1002_v2  ;;  %v1005_v7 = vld [vmem:[#allocation7 + $0x28] sm:$0xff]  ;;  %v924_v8 = vld [vmem:[%s7447_s6] sm:$0xff]  ;;  %v1006_v12 = vld [vmem:[#allocation7 + $0x30] sm:$0xff]  ;;  %vm3273_vm4 = vcmask 64512   ;;  %s8183_s15 = sld [smem:[#allocation48_spill]]  ;;  %vm3934_vm5 = vcmask 1043456  }
 0x1e1   : > { %6031 = vmatprep.subr.bf16.mxu0 %v6030_v3  ;;  %v948_v9 = vld [vmem:[%s7454_s10] sm:$0xff]  ;;  %v6038_v11 = vpack.c.bf16 %v1005_v7, %v1004_v6  ;;  %v1007_v13 = vld [vmem:[#allocation7 + $0x38] sm:$0xff]  ;;  %v925_v15 = vld [vmem:[%s7447_s6 + $0x8] sm:$0xff]  ;;  %vm3929_vm6 = vcmask 31744   ;;  %s8185_s26 = sld [smem:[#allocation49_spill]]  ;;  %s8186_s2 = sld [smem:[#allocation50_spill]] }
 0x1e2   : > { %6033 = vmatpush3.bf16.msra.mxu0 %v6030_v3  ;;  %v7490_v10 = vsub.f32 %v924_v8, %v948_v9  ;;  %v6042_v14 = vpack.c.bf16 %v1007_v13, %v1006_v12  ;;  %v949_v16 = vld [vmem:[%s7454_s10 + $0x8] sm:$0xff]  ;;  %v926_v17 = vld [vmem:[%s7447_s6 + $0x10] sm:$0xff]  ;;  %v927_v21 = vld [vmem:[%s7447_s6 + $0x18] sm:$0xff]  ;;  %s8187_s24 = sld [smem:[#allocation52_spill]]  ;;  %vm4583_vm7 = vcmask 1041408   ;;  %vm4580_vm8 = vcmask 15360  }
 0x1e3   : > { %6035 = vmatprep.subr.bf16.mxu0 %v6034_v5  ;;  %v950_v18 = vld [vmem:[%s7454_s10 + $0x10] sm:$0xff]  ;;  %v7498_v19 = vsub.f32 %v925_v15, %v949_v16  ;;  %v951_v22 = vld [vmem:[%s7454_s10 + $0x18] sm:$0xff]  ;;  %v928_v23 = vld [vmem:[%s7447_s6 + $0x20] sm:$0xff]  ;;  %vm4904_vm9 = vcmask 27648   ;;  %p920_p6 = scmp.lt.s32.totalorder %s7030_s23, 1 }
 0x1e4   : > { %5594 = vmatprep.mubr.msk.f32.mxu0 %vm1020_vm0, %v7490_v10  ;;  %v7500_v20 = vsub.f32 %v926_v17, %v950_v18  ;;  %v952_v24 = vld [vmem:[%s7454_s10 + $0x20] sm:$0xff]  ;;  %v7508_v25 = vsub.f32 %v927_v21, %v951_v22  ;;  %v929_v27 = vld [vmem:[%s7447_s6 + $0x28] sm:$0xff]  ;;  %v930_v29 = vld [vmem:[%s7447_s6 + $0x30] sm:$0xff] }
 0x1e5   : > { %v7512_v26 = vsub.f32 %v928_v23, %v952_v24  ;;  %v953_v28 = vld [vmem:[%s7454_s10 + $0x28] sm:$0xff]  ;;  %v954_v30 = vld [vmem:[%s7454_s10 + $0x30] sm:$0xff]  ;;  %v931_v33 = vld [vmem:[%s7447_s6 + $0x38] sm:$0xff]  ;;  %s8195_s23 = smov (!%p920_p6, %s7030_s23), 1 }
 0x1e6   : > { %6037 = vmatpush3.bf16.msra.mxu0 %v6034_v5  ;;  %v7520_v31 = vsub.f32 %v929_v27, %v953_v28  ;;  %v7524_v32 = vsub.f32 %v930_v29, %v954_v30  ;;  %v955_v34 = vld [vmem:[%s7454_s10 + $0x38] sm:$0xff]  ;;  %v932_v35 = vld [vmem:[%s7447_s6 + $0x40] sm:$0xff]  ;;  %v933_v39 = vld [vmem:[%s7447_s6 + $0x48] sm:$0xff]  ;;  %s5165_s9 = sshll.u32 %s8195_s23, 3 }
 0x1e7   : > { %6039 = vmatprep.subr.bf16.mxu0 %v6038_v11  ;;  %v956_v36 = vld [vmem:[%s7454_s10 + $0x40] sm:$0xff]  ;;  %v7532_v37 = vsub.f32 %v931_v33, %v955_v34  ;;  %v957_v40 = vld [vmem:[%s7454_s10 + $0x48] sm:$0xff]  ;;  %v934_v41 = vld [vmem:[%s7447_s6 + $0x50] sm:$0xff] }
 0x1e8   : > { %v7536_v38 = vsub.f32 %v932_v35, %v956_v36  ;;  %v958_v42 = vld [vmem:[%s7454_s10 + $0x50] sm:$0xff]  ;;  %v7544_v43 = vsub.f32 %v933_v39, %v957_v40  ;;  %v935_v45 = vld [vmem:[%s7447_s6 + $0x58] sm:$0xff]  ;;  %v936_v47 = vld [vmem:[%s7447_s6 + $0x60] sm:$0xff] }
 0x1e9   : > { %v7548_v44 = vsub.f32 %v934_v41, %v958_v42  ;;  %v959_v46 = vld [vmem:[%s7454_s10 + $0x58] sm:$0xff]  ;;  %v960_v48 = vld [vmem:[%s7454_s10 + $0x60] sm:$0xff]  ;;  %v937_v51 = vld [vmem:[%s7447_s6 + $0x68] sm:$0xff] }
 0x1ea   : > { %6041 = vmatpush3.bf16.msra.mxu0 %v6038_v11  ;;  %v7556_v49 = vsub.f32 %v935_v45, %v959_v46  ;;  %v7560_v50 = vsub.f32 %v936_v47, %v960_v48  ;;  %v961_v52 = vld [vmem:[%s7454_s10 + $0x68] sm:$0xff]  ;;  %v938_v53 = vld [vmem:[%s7447_s6 + $0x70] sm:$0xff]  ;;  %v939_v57 = vld [vmem:[%s7447_s6 + $0x78] sm:$0xff] }
 0x1eb   : > { %6043 = vmatprep.subr.bf16.mxu0 %v6042_v14  ;;  %v962_v54 = vld [vmem:[%s7454_s10 + $0x70] sm:$0xff]  ;;  %v7568_v55 = vsub.f32 %v937_v51, %v961_v52  ;;  %v963_v58 = vld [vmem:[%s7454_s10 + $0x78] sm:$0xff]  ;;  %v940_v59 = vld [vmem:[%s7447_s6 + $0x80] sm:$0xff] }
 0x1ec   : > { %v7572_v56 = vsub.f32 %v938_v53, %v962_v54  ;;  %v964_v60 = vld [vmem:[%s7454_s10 + $0x80] sm:$0xff]  ;;  %v7580_v61 = vsub.f32 %v939_v57, %v963_v58  ;;  %v941_v63 = vld [vmem:[%s7447_s6 + $0x88] sm:$0xff]  ;;  %v942_v1 = vld [vmem:[%s7447_s6 + $0x90] sm:$0xff] }
 0x1ed   : > { %v7584_v62 = vsub.f32 %v940_v59, %v964_v60  ;;  %v965_v0 = vld [vmem:[%s7454_s10 + $0x88] sm:$0xff]  ;;  %v966_v2 = vld [vmem:[%s7454_s10 + $0x90] sm:$0xff]  ;;  %v943_v5 = vld [vmem:[%s7447_s6 + $0x98] sm:$0xff] }
 0x1ee   : > { %6045 = vmatpush3.bf16.msra.mxu0 %v6042_v14  ;;  %v7592_v3 = vsub.f32 %v941_v63, %v965_v0  ;;  %v7596_v4 = vsub.f32 %v942_v1, %v966_v2  ;;  %v967_v6 = vld [vmem:[%s7454_s10 + $0x98] sm:$0xff]  ;;  %v944_v7 = vld [vmem:[%s7447_s6 + $0xa0] sm:$0xff]  ;;  %v945_v12 = vld [vmem:[%s7447_s6 + $0xa8] sm:$0xff] }
 0x1ef   : > { %v968_v8 = vld [vmem:[%s7454_s10 + $0xa0] sm:$0xff]  ;;  %v7604_v9 = vsub.f32 %v943_v5, %v967_v6  ;;  %v969_v13 = vld [vmem:[%s7454_s10 + $0xa8] sm:$0xff]  ;;  %v946_v14 = vld [vmem:[%s7447_s6 + $0xb0] sm:$0xff] }
 0x1f0   : > { %v7608_v11 = vsub.f32 %v944_v7, %v968_v8  ;;  %v970_v15 = vld [vmem:[%s7454_s10 + $0xb0] sm:$0xff]  ;;  %v7616_v16 = vsub.f32 %v945_v12, %v969_v13  ;;  %v947_v18 = vld [vmem:[%s7447_s6 + $0xb8] sm:$0xff]  ;;  %v7632_v23 = vld [vmem:[#allocation6] sm:$0xff]  ;;  %s8184_s6 = sld [smem:[#allocation47_spill]] }
 0x1f1   : > { %5595 = vmatmul.mubr.msk.f32.vlgmr.msra.gmra.mrb[0].mxu0 %vm1020_vm0, %v7498_v19  ;;  %v7620_v17 = vsub.f32 %v946_v14, %v970_v15  ;;  %v971_v21 = vld [vmem:[%s7454_s10 + $0xb8] sm:$0xff]  ;;  %5646 = vmatprep.mubr.msk.f32.mxu1 %vm1020_vm0, %v7632_v23  ;;  %v997_v46 = vld [vmem:[#allocation6 + $0x8] sm:$0xff]  ;;  %v998_v48 = vld [vmem:[#allocation6 + $0x10] sm:$0xff] }
 0x1f2   : > { %5597 = vmatprep.mubr.msk.f32.mxu0 %vm1020_vm0, %v7500_v20  ;;  %v7626_v22 = vsub.f32 %v947_v18, %v971_v21  ;;  %v999_v53 = vld [vmem:[#allocation6 + $0x18] sm:$0xff]  ;;  %v1016_v15 = vld [vmem:[#allocation10] sm:$0xff]  ;;  %v1017_v18 = vld [vmem:[#allocation10 + $0x8] sm:$0xff] }
 0x1f5   : > { %5598 = vmatmul.mubr.msk.f32.gmra.mrb[2].mxu0 %vm1020_vm0, %v7508_v25 }
 0x1f6   : > { %5600 = vmatprep.mubr.msk.f32.mxu0 %vm1020_vm0, %v7512_v26 }
 0x1f9   : > { %5601 = vmatmul.mubr.msk.f32.gmra.mrb[4].mxu0 %vm1020_vm0, %v7520_v31 }
 0x1fa   : > { %5603 = vmatprep.mubr.msk.f32.mxu0 %vm1020_vm0, %v7524_v32 }
 0x1fd   : > { %5604 = vmatmul.mubr.msk.f32.gmra.mrb[6].mxu0 %vm1020_vm0, %v7532_v37 }
 0x1fe   : > { %5606 = vmatprep.mubr.msk.f32.mxu0 %vm1020_vm0, %v7536_v38 }
 0x201   : > { %5607 = vmatmul.mubr.msk.f32.gmra.mrb[8].mxu0 %vm1020_vm0, %v7544_v43 }
 0x202   : > { %5609 = vmatprep.mubr.msk.f32.mxu0 %vm1020_vm0, %v7548_v44 }
 0x205   : > { %5610 = vmatmul.mubr.msk.f32.gmra.mrb[10].mxu0 %vm1020_vm0, %v7556_v49 }
 0x206   : > { %5612 = vmatprep.mubr.msk.f32.mxu0 %vm1020_vm0, %v7560_v50 }
 0x209   : > { %5613 = vmatmul.mubr.msk.f32.gmra.mrb[12].mxu0 %vm1020_vm0, %v7568_v55 }
 0x20a   : > { %5615 = vmatprep.mubr.msk.f32.mxu0 %vm1020_vm0, %v7572_v56 }
 0x20d   : > { %5616 = vmatmul.mubr.msk.f32.gmra.mrb[14].mxu0 %vm1020_vm0, %v7580_v61 }
 0x20e   : > { %5618 = vmatprep.mubr.msk.f32.mxu0 %vm1020_vm0, %v7584_v62 }
 0x211   : > { %5619 = vmatmul.mubr.msk.f32.gmra.mrb[16].mxu0 %vm1020_vm0, %v7592_v3 }
 0x212   : > { %5621 = vmatprep.mubr.msk.f32.mxu0 %vm1020_vm0, %v7596_v4 }
 0x215   : > { %5622 = vmatmul.mubr.msk.f32.gmra.mrb[18].mxu0 %vm1020_vm0, %v7604_v9 }
 0x216   : > { %5624 = vmatprep.mubr.msk.f32.mxu0 %vm1020_vm0, %v7608_v11 }
 0x219   : > { %5625 = vmatmul.mubr.msk.f32.gmra.mrb[20].mxu0 %vm1020_vm0, %v7616_v16 }
 0x21a   : > { %5627 = vmatprep.mubr.msk.f32.mxu0 %vm1020_vm0, %v7620_v17 }
 0x21d   : > { %5628 = vmatmul.mubr.msk.f32.gmra.mrb[22].mxu0 %vm1020_vm0, %v7626_v22 }
 0x2c4   : > { %v5596_v24 = vpop.f32.mrb[0].mxu0 }
 0x2c5   : > { %v1159_v27 = vpop.f32.mrb[1].mxu0 }
 0x2c6   : > { %v6046_v28 = vpack.c.bf16 %v5596_v24, %v1159_v27 }
 0x2c8   : > { %v5599_v29 = vpop.f32.mrb[2].mxu0  ;;  %6047 = vmatprep.subr.bf16.mxu1 %v6046_v28 }
 0x2c9   : > { %v1169_v30 = vpop.f32.mrb[3].mxu0  ;;  %6049 = vmatpush3.bf16.msra.mxu1 %v6046_v28  ;;  %v6094_v28 = vpack.c.bf16 %v1017_v18, %v1016_v15  ;;  %v1015_v18 = vld [vmem:[#allocation9 + $0x38] sm:$0xff] }
 0x2ca   : > { %v6050_v33 = vpack.c.bf16 %v5599_v29, %v1169_v30  ;;  %v1018_v29 = vld [vmem:[#allocation10 + $0x10] sm:$0xff]  ;;  %v1019_v30 = vld [vmem:[#allocation10 + $0x18] sm:$0xff] }
 0x2cc   : > { %v5602_v34 = vpop.f32.mrb[4].mxu0  ;;  %6051 = vmatprep.subr.bf16.mxu1 %v6050_v33 }
 0x2cd   : > { %v1179_v35 = vpop.f32.mrb[5].mxu0  ;;  %6053 = vmatpush3.bf16.msra.mxu1 %v6050_v33  ;;  %v6098_v33 = vpack.c.bf16 %v1019_v30, %v1018_v29 }
 0x2ce   : > { %v6054_v36 = vpack.c.bf16 %v5602_v34, %v1179_v35 }
 0x2d0   : > { %v5605_v39 = vpop.f32.mrb[6].mxu0  ;;  %6055 = vmatprep.subr.bf16.mxu1 %v6054_v36 }
 0x2d1   : > { %v1189_v40 = vpop.f32.mrb[7].mxu0  ;;  %6057 = vmatpush3.bf16.msra.mxu1 %v6054_v36 }
 0x2d2   : > { %v6058_v41 = vpack.c.bf16 %v5605_v39, %v1189_v40 }
 0x2d4   : > { %v5608_v42 = vpop.f32.mrb[8].mxu0  ;;  %6059 = vmatprep.subr.bf16.mxu1 %v6058_v41 }
 0x2d5   : > { %v1199_v45 = vpop.f32.mrb[9].mxu0  ;;  %6061 = vmatpush3.bf16.msra.mxu1 %v6058_v41 }
 0x2d6   : > { %v6062_v47 = vpack.c.bf16 %v5608_v42, %v1199_v45 }
 0x2d8   : > { %v5611_v51 = vpop.f32.mrb[10].mxu0  ;;  %5647 = vmatmul.mubr.msk.f32.vlgmr.msra.gmra.mrb[0].mxu1 %vm1020_vm0, %v997_v46  ;;  %6063 = vmatprep.subr.bf16.mxu1 %v6062_v47 }
 0x2d9   : > { %v1209_v52 = vpop.f32.mrb[11].mxu0  ;;  %6065 = vmatpush3.bf16.msra.mxu1 %v6062_v47  ;;  %5649 = vmatprep.mubr.msk.f32.mxu1 %vm1020_vm0, %v998_v48 }
 0x2da   : > { %v6066_v54 = vpack.c.bf16 %v5611_v51, %v1209_v52  ;;  %v1008_v51 = vld [vmem:[#allocation9] sm:$0xff] }
 0x2db   : > { %5730 = vmatprep.mubr.msk.f32.mxu0 %vm1545_vm1, %v1008_v51 }
 0x2dc   : > { %v5614_v57 = vpop.f32.mrb[12].mxu0  ;;  %5650 = vmatmul.mubr.msk.f32.gmra.mrb[2].mxu1 %vm1020_vm0, %v999_v53  ;;  %6067 = vmatprep.subr.bf16.mxu1 %v6066_v54 }
 0x2dd   : > { %v1219_v58 = vpop.f32.mrb[13].mxu0  ;;  %6069 = vmatpush3.bf16.msra.mxu1 %v6066_v54  ;;  %5668 = vmatprep.mubr.msk.f32.mxu1 %vm1020_vm0, %v7632_v23 }
 0x2de   : > { %v6070_v59 = vpack.c.bf16 %v5614_v57, %v1219_v58 }
 0x2e0   : > { %v5617_v60 = vpop.f32.mrb[14].mxu0  ;;  %6071 = vmatprep.subr.bf16.mxu1 %v6070_v59 }
 0x2e1   : > { %v1229_v63 = vpop.f32.mrb[15].mxu0  ;;  %6073 = vmatpush3.bf16.msra.mxu1 %v6070_v59 }
 0x2e2   : > { %v6074_v0 = vpack.c.bf16 %v5617_v60, %v1229_v63  ;;  %v1009_v60 = vld [vmem:[#allocation9 + $0x8] sm:$0xff]  ;;  %v1010_v63 = vld [vmem:[#allocation9 + $0x10] sm:$0xff] }
 0x2e4   : > { %6075 = vmatprep.subr.bf16.mxu1 %v6074_v0  ;;  %v5620_v1 = vpop.f32.mrb[16].mxu0 }
 0x2e5   : > { %6077 = vmatpush3.bf16.msra.mxu1 %v6074_v0  ;;  %v1239_v2 = vpop.f32.mrb[17].mxu0  ;;  %v1011_v0 = vld [vmem:[#allocation9 + $0x18] sm:$0xff] }
 0x2e6   : > { %v6078_v5 = vpack.c.bf16 %v5620_v1, %v1239_v2  ;;  %v1012_v1 = vld [vmem:[#allocation9 + $0x20] sm:$0xff] }
 0x2e8   : > { %5669 = vmatmul.mubr.msk.f32.vlgmr.msra.gmra.mrb[4].mxu1 %vm1020_vm0, %v997_v46  ;;  %v5623_v6 = vpop.f32.mrb[18].mxu0  ;;  %6079 = vmatprep.subr.bf16.mxu1 %v6078_v5 }
 0x2e9   : > { %5671 = vmatprep.mubr.msk.f32.mxu1 %vm1020_vm0, %v998_v48  ;;  %v1249_v7 = vpop.f32.mrb[19].mxu0  ;;  %6081 = vmatpush3.bf16.msra.mxu1 %v6078_v5 }
 0x2ea   : > { %v6082_v8 = vpack.c.bf16 %v5623_v6, %v1249_v7  ;;  %v1013_v6 = vld [vmem:[#allocation9 + $0x28] sm:$0xff] }
 0x2ec   : > { %5672 = vmatmul.mubr.msk.f32.gmra.mrb[6].mxu1 %vm1020_vm0, %v999_v53  ;;  %v5626_v12 = vpop.f32.mrb[20].mxu0  ;;  %6083 = vmatprep.subr.bf16.mxu1 %v6082_v8 }
 0x2ed   : > { %v1259_v13 = vpop.f32.mrb[21].mxu0  ;;  %6085 = vmatpush3.bf16.msra.mxu1 %v6082_v8  ;;  %5690 = vmatprep.mubr.msk.f32.mxu1 %vm1020_vm0, %v7632_v23  ;;  %v1014_v8 = vld [vmem:[#allocation9 + $0x30] sm:$0xff] }
 0x2ee   : > { %v6086_v14 = vpack.c.bf16 %v5626_v12, %v1259_v13  ;;  %v2154_v12 = vld [vmem:[#allocation13] sm:$0xff]  ;;  %v2155_v13 = vld [vmem:[#allocation13 + $0x8] sm:$0xff] }
 0x2f0   : > { %v5629_v21 = vpop.f32.mrb[22].mxu0  ;;  %6087 = vmatprep.subr.bf16.mxu1 %v6086_v14 }
 0x2f1   : > { %v1269_v24 = vpop.f32.mrb[23].mxu0  ;;  %6089 = vmatpush3.bf16.msra.mxu1 %v6086_v14 }
 0x2f2   : > { %v6090_v27 = vpack.c.bf16 %v5629_v21, %v1269_v24  ;;  %v6126_v24 = vpack.c.bf16 %v2155_v13, %v2154_v12 }
 0x2f4   : > { %6091 = vmatprep.subr.bf16.mxu1 %v6090_v27 }
 0x2f5   : > { %6093 = vmatpush3.bf16.msra.mxu1 %v6090_v27  ;;  %v2156_v27 = vld [vmem:[#allocation13 + $0x10] sm:$0xff] }
 0x2f6   : > { %6095 = vmatprep.subr.bf16.mxu1 %v6094_v28 }
 0x2f8   : > { %5691 = vmatmul.mubr.msk.f32.vlgmr.msra.gmra.mrb[8].mxu1 %vm1020_vm0, %v997_v46 }
 0x2f9   : > { %5693 = vmatprep.mubr.msk.f32.mxu1 %vm1020_vm0, %v998_v48  ;;  %6097 = vmatpush3.bf16.msra.mxu1 %v6094_v28  ;;  %v2157_v28 = vld [vmem:[#allocation13 + $0x18] sm:$0xff] }
 0x2fa   : > { %6099 = vmatprep.subr.bf16.mxu1 %v6098_v33  ;;  %v6130_v29 = vpack.c.bf16 %v2157_v28, %v2156_v27 }
 0x2fc   : > { %5694 = vmatmul.mubr.msk.f32.gmra.mrb[10].mxu1 %vm1020_vm0, %v999_v53 }
 0x2fd   : > { %6101 = vmatpush3.bf16.msra.mxu1 %v6098_v33 }
 0x3ab   : > { %v7649_v23 = vpop.f32.mrb[0].mxu1 }
 0x3ac   : > { %v7651_v34 = vpop.f32.mrb[1].mxu1 }
 0x3ad   : > { %5704 = vmatprep.mubr.msk.f32.mxu1 %vm1545_vm1, %v7651_v34 }
 0x3ae   : > { %5705 = vmatmul.mubr.msk.f32.vlgmr.msra.gmra.mrb[12].mxu1 %vm1545_vm1, %v7649_v23 }
 0x3af   : > { %v7657_v35 = vpop.f32.mrb[2].mxu1 }
 0x3b0   : > { %v7659_v36 = vpop.f32.mrb[3].mxu1 }
 0x3b1   : > { %5707 = vmatprep.mubr.msk.f32.mxu1 %vm1545_vm1, %v7659_v36 }
 0x3b2   : > { %5708 = vmatmul.mubr.msk.f32.gmra.mrb[14].mxu1 %vm1545_vm1, %v7657_v35 }
 0x3bb   : > { %v7665_v39 = vpop.f32.mrb[4].mxu1 }
 0x3bc   : > { %v7667_v40 = vpop.f32.mrb[5].mxu1 }
 0x3bd   : > { %5710 = vmatprep.mubr.msk.f32.mxu1 %vm1545_vm1, %v7667_v40 }
 0x3be   : > { %5711 = vmatmul.mubr.msk.f32.gmra.mrb[16].mxu1 %vm1545_vm1, %v7665_v39 }
 0x3bf   : > { %v7673_v41 = vpop.f32.mrb[6].mxu1 }
 0x3c0   : > { %v7675_v42 = vpop.f32.mrb[7].mxu1 }
 0x3c1   : > { %5713 = vmatprep.mubr.msk.f32.mxu1 %vm1545_vm1, %v7675_v42 }
 0x3c2   : > { %5714 = vmatmul.mubr.msk.f32.gmra.mrb[18].mxu1 %vm1545_vm1, %v7673_v41 }
 0x3cb   : > { %v7681_v45 = vpop.f32.mrb[8].mxu1 }
 0x3cc   : > { %v7683_v46 = vpop.f32.mrb[9].mxu1 }
 0x3cd   : > { %5716 = vmatprep.mubr.msk.f32.mxu1 %vm1545_vm1, %v7683_v46 }
 0x3ce   : > { %5717 = vmatmul.mubr.msk.f32.gmra.mrb[20].mxu1 %vm1545_vm1, %v7681_v45 }
 0x3cf   : > { %v7689_v47 = vpop.f32.mrb[10].mxu1 }
 0x3d0   : > { %v7691_v48 = vpop.f32.mrb[11].mxu1 }
 0x3d1   : > { %5719 = vmatprep.mubr.msk.f32.mxu1 %vm1545_vm1, %v7691_v48 }
 0x3d2   : > { %5720 = vmatmul.mubr.msk.f32.gmra.mrb[22].mxu1 %vm1545_vm1, %v7689_v47 }
 0x3d3   : > { %5770 = vmatprep.mubr.msk.f32.mxu1 %vm1545_vm1, %v1008_v51 }
 0x481   : > { %v5706_v52 = vpop.f32.mrb[12].mxu1 }
 0x482   : > { %v1648_v53 = vpop.f32.mrb[13].mxu1 }
 0x483   : > { %v6102_v54 = vpack.c.bf16 %v5706_v52, %v1648_v53 }
 0x485   : > { %v5709_v57 = vpop.f32.mrb[14].mxu1  ;;  %6103 = vmatprep.subr.bf16.mxu0 %v6102_v54 }
 0x486   : > { %v1658_v58 = vpop.f32.mrb[15].mxu1  ;;  %6105 = vmatpush3.bf16.msra.mxu0 %v6102_v54 }
 0x487   : > { %v6106_v59 = vpack.c.bf16 %v5709_v57, %v1658_v58  ;;  %v7745_v57 = vld [vmem:[#allocation12] sm:$0xff] }
 0x489   : > { %6107 = vmatprep.subr.bf16.mxu0 %v6106_v59 }
 0x48a   : > { %6109 = vmatpush3.bf16.msra.mxu0 %v6106_v59 }
 0x48d   : > { %5731 = vmatmul.mubr.msk.f32.vlgmr.msra.gmra.mrb[24].mxu0 %vm1545_vm1, %v1009_v60 }
 0x48e   : > { %5733 = vmatprep.mubr.msk.f32.mxu0 %vm1545_vm1, %v1010_v63 }
 0x491   : > { %v5712_v2 = vpop.f32.mrb[16].mxu1  ;;  %5734 = vmatmul.mubr.msk.f32.gmra.mrb[26].mxu0 %vm1545_vm1, %v1011_v0 }
 0x492   : > { %v1668_v5 = vpop.f32.mrb[17].mxu1  ;;  %5736 = vmatprep.mubr.msk.f32.mxu0 %vm1545_vm1, %v1012_v1 }
 0x493   : > { %v6110_v7 = vpack.c.bf16 %v5712_v2, %v1668_v5 }
 0x495   : > { %v5715_v14 = vpop.f32.mrb[18].mxu1  ;;  %5737 = vmatmul.mubr.msk.f32.gmra.mrb[28].mxu0 %vm1545_vm1, %v1013_v6  ;;  %6111 = vmatprep.subr.bf16.mxu0 %v6110_v7 }
 0x496   : > { %v1678_v15 = vpop.f32.mrb[19].mxu1  ;;  %6113 = vmatpush3.bf16.msra.mxu0 %v6110_v7  ;;  %5739 = vmatprep.mubr.msk.f32.mxu0 %vm1545_vm1, %v1014_v8 }
 0x497   : > { %v6114_v21 = vpack.c.bf16 %v5715_v14, %v1678_v15 }
 0x499   : > { %5740 = vmatmul.mubr.msk.f32.gmra.mrb[30].mxu0 %vm1545_vm1, %v1015_v18  ;;  %6115 = vmatprep.subr.bf16.mxu0 %v6114_v21 }
 0x49a   : > { %6117 = vmatpush3.bf16.msra.mxu0 %v6114_v21  ;;  %5750 = vmatprep.mubr.msk.f32.mxu0 %vm1545_vm1, %v1008_v51 }
 0x49b   : > { %6127 = vmatprep.subr.bf16.mxu0 %v6126_v24 }
 0x49d   : > { %5751 = vmatmul.mubr.msk.f32.vlgmr.msra.gmra.mrb[32].mxu0 %vm1545_vm1, %v1009_v60 }
 0x49e   : > { %5753 = vmatprep.mubr.msk.f32.mxu0 %vm1545_vm1, %v1010_v63  ;;  %6129 = vmatpush3.bf16.msra.mxu0 %v6126_v24 }
 0x49f   : > { %6131 = vmatprep.subr.bf16.mxu0 %v6130_v29 }
 0x4a1   : > { %5754 = vmatmul.mubr.msk.f32.gmra.mrb[34].mxu0 %vm1545_vm1, %v1011_v0  ;;  %v5718_v30 = vpop.f32.mrb[20].mxu1 }
 0x4a2   : > { %5756 = vmatprep.mubr.msk.f32.mxu0 %vm1545_vm1, %v1012_v1  ;;  %6133 = vmatpush3.bf16.msra.mxu0 %v6130_v29  ;;  %v1688_v33 = vpop.f32.mrb[21].mxu1 }
 0x4a3   : > { %v6118_v52 = vpack.c.bf16 %v5718_v30, %v1688_v33 }
 0x4a5   : > { %5757 = vmatmul.mubr.msk.f32.gmra.mrb[36].mxu0 %vm1545_vm1, %v1013_v6  ;;  %v5721_v53 = vpop.f32.mrb[22].mxu1  ;;  %6119 = vmatprep.subr.bf16.mxu1 %v6118_v52 }
 0x4a6   : > { %5759 = vmatprep.mubr.msk.f32.mxu0 %vm1545_vm1, %v1014_v8  ;;  %v1698_v51 = vpop.f32.mrb[23].mxu1  ;;  %6121 = vmatpush3.bf16.msra.mxu1 %v6118_v52 }
 0x4a7   : > { %v6122_v54 = vpack.c.bf16 %v5721_v53, %v1698_v51 }
 0x4a9   : > { %5760 = vmatmul.mubr.msk.f32.gmra.mrb[38].mxu0 %vm1545_vm1, %v1015_v18  ;;  %6123 = vmatprep.subr.bf16.mxu1 %v6122_v54 }
 0x4aa   : > { %5790 = vmatprep.mubr.msk.f32.mxu0 %vm1545_vm1, %v7651_v34  ;;  %6125 = vmatpush3.bf16.msra.mxu1 %v6122_v54 }
 0x4ad   : > { %5791 = vmatmul.mubr.msk.f32.vlgmr.msra.gmra.mrb[40].mxu0 %vm1545_vm1, %v7649_v23  ;;  %5771 = vmatmul.mubr.msk.f32.vlgmr.msra.gmra.mrb[24].mxu1 %vm1545_vm1, %v1009_v60 }
 0x4ae   : > { %5793 = vmatprep.mubr.msk.f32.mxu0 %vm1545_vm1, %v7659_v36  ;;  %5773 = vmatprep.mubr.msk.f32.mxu1 %vm1545_vm1, %v1010_v63 }
 0x4b1   : > { %5794 = vmatmul.mubr.msk.f32.gmra.mrb[42].mxu0 %vm1545_vm1, %v7657_v35  ;;  %5774 = vmatmul.mubr.msk.f32.gmra.mrb[26].mxu1 %vm1545_vm1, %v1011_v0 }
 0x4b2   : > { %5796 = vmatprep.mubr.msk.f32.mxu0 %vm1545_vm1, %v7667_v40  ;;  %5776 = vmatprep.mubr.msk.f32.mxu1 %vm1545_vm1, %v1012_v1 }
 0x4b5   : > { %5797 = vmatmul.mubr.msk.f32.gmra.mrb[44].mxu0 %vm1545_vm1, %v7665_v39  ;;  %5777 = vmatmul.mubr.msk.f32.gmra.mrb[28].mxu1 %vm1545_vm1, %v1013_v6 }
 0x4b6   : > { %5799 = vmatprep.mubr.msk.f32.mxu0 %vm1545_vm1, %v7675_v42  ;;  %5779 = vmatprep.mubr.msk.f32.mxu1 %vm1545_vm1, %v1014_v8 }
 0x4b9   : > { %5800 = vmatmul.mubr.msk.f32.gmra.mrb[46].mxu0 %vm1545_vm1, %v7673_v41  ;;  %5780 = vmatmul.mubr.msk.f32.gmra.mrb[30].mxu1 %vm1545_vm1, %v1015_v18 }
 0x4ba   : > { %5802 = vmatprep.mubr.msk.f32.mxu0 %vm1545_vm1, %v7683_v46  ;;  %5816 = vmatprep.mubr.msk.f32.mxu1 %vm1545_vm1, %v7745_v57 }
 0x4bd   : > { %5803 = vmatmul.mubr.msk.f32.gmra.mrb[48].mxu0 %vm1545_vm1, %v7681_v45 }
 0x4be   : > { %5805 = vmatprep.mubr.msk.f32.mxu0 %vm1545_vm1, %v7691_v48 }
 0x4c1   : > { %5806 = vmatmul.mubr.msk.f32.gmra.mrb[50].mxu0 %vm1545_vm1, %v7689_v47 }
 0x560   : > { %v5732_v58 = vpop.f32.mrb[24].mxu0 }
 0x561   : > { %v2047_v59 = vsub.f32 %v7498_v19, %v5732_v58  ;;  %v1797_v60 = vpop.f32.mrb[25].mxu0 }
 0x562   : > { %v2046_v63 = vsub.f32 %v7490_v10, %v1797_v60 }
 0x563   : > { %v2071_v0 = vand.u32 2147483647, %v2047_v59 }
 0x564   : > { %v2070_v1 = vand.u32 2147483647, %v2046_v63  ;;  %v5735_v2 = vpop.f32.mrb[26].mxu0 }
 0x565   : > { %v2095_v5 = vsel %vm1020_vm0, %v2071_v0, 0.0  ;;  %v2049_v6 = vsub.f32 %v7508_v25, %v5735_v2  ;;  %v1807_v7 = vpop.f32.mrb[27].mxu0 }
 0x566   : > { %v2094_v8 = vsel %vm1020_vm0, %v2070_v1, 0.0  ;;  %v2048_v12 = vsub.f32 %v7500_v20, %v1807_v7 }
 0x567   : > { %v2096_v13 = vadd.f32 %v2095_v5, %v2094_v8  ;;  %v2073_v14 = vand.u32 2147483647, %v2049_v6 }
 0x568   : > { %v2072_v15 = vand.u32 2147483647, %v2048_v12  ;;  %v5738_v18 = vpop.f32.mrb[28].mxu0 }
 0x569   : > { %v2051_v19 = vsub.f32 %v7520_v31, %v5738_v18  ;;  %v1817_v21 = vpop.f32.mrb[29].mxu0  ;;  %v2099_v28 = vsel %vm1020_vm0, %v2073_v14, 0.0 }
 0x56a   : > { %v2097_v10 = vsel %vm1020_vm0, %v2072_v15, 0.0  ;;  %v2050_v24 = vsub.f32 %v7512_v26, %v1817_v21 }
 0x56b   : > { %v2098_v27 = vadd.f32 %v2097_v10, %v2096_v13  ;;  %v2075_v25 = vand.u32 2147483647, %v2051_v19 }
 0x56c   : > { %v2074_v29 = vand.u32 2147483647, %v2050_v24  ;;  %v5741_v30 = vpop.f32.mrb[30].mxu0 }
 0x56d   : > { %v2100_v33 = vadd.f32 %v2099_v28, %v2098_v27  ;;  %v2053_v20 = vsub.f32 %v7532_v37, %v5741_v30  ;;  %v1827_v52 = vpop.f32.mrb[31].mxu0  ;;  %v2103_v54 = vsel %vm1020_vm0, %v2075_v25, 0.0 }
 0x56e   : > { %v2101_v53 = vsel %vm1020_vm0, %v2074_v29, 0.0  ;;  %v2052_v51 = vsub.f32 %v7524_v32, %v1827_v52 }
 0x56f   : > { %v2102_v31 = vadd.f32 %v2101_v53, %v2100_v33  ;;  %v2077_v58 = vand.u32 2147483647, %v2053_v20 }
 0x570   : > { %v2076_v59 = vand.u32 2147483647, %v2052_v51  ;;  %v5752_v26 = vpop.f32.mrb[32].mxu0 }
 0x571   : > { %v2104_v60 = vadd.f32 %v2103_v54, %v2102_v31  ;;  %v2055_v63 = vsub.f32 %v7544_v43, %v5752_v26  ;;  %v1902_v0 = vpop.f32.mrb[33].mxu0  ;;  %v2107_v5 = vsel %vm1020_vm0, %v2077_v58, 0.0 }
 0x572   : > { %v2105_v1 = vsel %vm1020_vm0, %v2076_v59, 0.0  ;;  %v2054_v2 = vsub.f32 %v7536_v38, %v1902_v0 }
 0x573   : > { %v2106_v37 = vadd.f32 %v2105_v1, %v2104_v60  ;;  %v2079_v6 = vand.u32 2147483647, %v2055_v63 }
 0x574   : > { %v2078_v7 = vand.u32 2147483647, %v2054_v2  ;;  %v5755_v32 = vpop.f32.mrb[34].mxu0 }
 0x575   : > { %v2108_v8 = vadd.f32 %v2107_v5, %v2106_v37  ;;  %v2057_v12 = vsub.f32 %v7556_v49, %v5755_v32  ;;  %v1912_v13 = vpop.f32.mrb[35].mxu0  ;;  %v2111_v18 = vsel %vm1020_vm0, %v2079_v6, 0.0 }
 0x576   : > { %v2109_v14 = vsel %vm1020_vm0, %v2078_v7, 0.0  ;;  %v2056_v15 = vsub.f32 %v7548_v44, %v1912_v13 }
 0x577   : > { %v2110_v43 = vadd.f32 %v2109_v14, %v2108_v8  ;;  %v2081_v19 = vand.u32 2147483647, %v2057_v12 }
 0x578   : > { %v2080_v21 = vand.u32 2147483647, %v2056_v15  ;;  %v5758_v38 = vpop.f32.mrb[36].mxu0 }
 0x579   : > { %v2112_v10 = vadd.f32 %v2111_v18, %v2110_v43  ;;  %v2059_v24 = vsub.f32 %v7568_v55, %v5758_v38  ;;  %v1922_v27 = vpop.f32.mrb[37].mxu0  ;;  %v2115_v30 = vsel %vm1020_vm0, %v2081_v19, 0.0 }
 0x57a   : > { %v2113_v28 = vsel %vm1020_vm0, %v2080_v21, 0.0  ;;  %v2058_v25 = vsub.f32 %v7560_v50, %v1922_v27 }
 0x57b   : > { %v2114_v49 = vadd.f32 %v2113_v28, %v2112_v10  ;;  %v2083_v29 = vand.u32 2147483647, %v2059_v24  ;;  %v2153_v28 = vld [vmem:[#allocation12 + $0x8] sm:$0xff] }
 0x57c   : > { %v2082_v33 = vand.u32 2147483647, %v2058_v25  ;;  %v5761_v44 = vpop.f32.mrb[38].mxu0 }
 0x57d   : > { %v2116_v20 = vadd.f32 %v2115_v30, %v2114_v49  ;;  %v2061_v52 = vsub.f32 %v7580_v61, %v5761_v44  ;;  %v1932_v53 = vpop.f32.mrb[39].mxu0  ;;  %v2119_v55 = vsel %vm1020_vm0, %v2083_v29, 0.0 }
 0x57e   : > { %v2117_v51 = vsel %vm1020_vm0, %v2082_v33, 0.0  ;;  %v2060_v31 = vsub.f32 %v7572_v56, %v1932_v53 }
 0x57f   : > { %v2118_v54 = vadd.f32 %v2117_v51, %v2116_v20  ;;  %v2085_v58 = vand.u32 2147483647, %v2061_v52 }
 0x580   : > { %v2084_v59 = vand.u32 2147483647, %v2060_v31  ;;  %v5792_v50 = vpop.f32.mrb[40].mxu0  ;;  %v5772_v26 = vpop.f32.mrb[24].mxu1 }
 0x581   : > { %v2120_v60 = vadd.f32 %v2119_v55, %v2118_v54  ;;  %v2230_v63 = vpop.f32.mrb[41].mxu0  ;;  %v2063_v0 = vsub.f32 %v7592_v3, %v5772_v26  ;;  %v2007_v1 = vpop.f32.mrb[25].mxu1  ;;  %v2123_v56 = vsel %vm1020_vm0, %v2085_v58, 0.0 }
 0x582   : > { %v2121_v2 = vsel %vm1020_vm0, %v2084_v59, 0.0  ;;  %v6134_v61 = vpack.c.bf16 %v5792_v50, %v2230_v63  ;;  %v2062_v37 = vsub.f32 %v7584_v62, %v2007_v1 }
 0x583   : > { %v2122_v5 = vadd.f32 %v2121_v2, %v2120_v60  ;;  %v2087_v6 = vand.u32 2147483647, %v2063_v0 }
 0x584   : > { %v5795_v7 = vpop.f32.mrb[42].mxu0  ;;  %6135 = vmatprep.subr.bf16.mxu1 %v6134_v61  ;;  %v2086_v32 = vand.u32 2147483647, %v2062_v37  ;;  %v5775_v8 = vpop.f32.mrb[26].mxu1 }
 0x585   : > { %v2240_v12 = vpop.f32.mrb[43].mxu0  ;;  %6137 = vmatpush3.bf16.msra.mxu1 %v6134_v61  ;;  %v2124_v13 = vadd.f32 %v2123_v56, %v2122_v5  ;;  %v2065_v14 = vsub.f32 %v7604_v9, %v5775_v8  ;;  %v2017_v3 = vpop.f32.mrb[27].mxu1  ;;  %v2127_v43 = vsel %vm1020_vm0, %v2087_v6, 0.0  ;;  %v2163_v8 = vld [vmem:[#allocation15 + $0x8] sm:$0xff] }
 0x586   : > { %v6138_v15 = vpack.c.bf16 %v5795_v7, %v2240_v12  ;;  %v2125_v18 = vsel %vm1020_vm0, %v2086_v32, 0.0  ;;  %v2064_v62 = vsub.f32 %v7596_v4, %v2017_v3  ;;  %v2162_v32 = vld [vmem:[#allocation15] sm:$0xff] }
 0x587   : > { %v2126_v19 = vadd.f32 %v2125_v18, %v2124_v13  ;;  %v2089_v21 = vand.u32 2147483647, %v2065_v14  ;;  %v6158_v12 = vpack.c.bf16 %v2163_v8, %v2162_v32 }
 0x588   : > { %v5798_v38 = vpop.f32.mrb[44].mxu0  ;;  %6139 = vmatprep.subr.bf16.mxu1 %v6138_v15  ;;  %v2088_v10 = vand.u32 2147483647, %v2064_v62  ;;  %v5778_v24 = vpop.f32.mrb[28].mxu1 }
 0x589   : > { %v2250_v27 = vpop.f32.mrb[45].mxu0  ;;  %6141 = vmatpush3.bf16.msra.mxu1 %v6138_v15  ;;  %v2128_v25 = vadd.f32 %v2127_v43, %v2126_v19  ;;  %v2067_v9 = vsub.f32 %v7616_v16, %v5778_v24  ;;  %v2027_v49 = vpop.f32.mrb[29].mxu1  ;;  %v2131_v30 = vsel %vm1020_vm0, %v2089_v21, 0.0 }
 0x58a   : > { %v6142_v29 = vpack.c.bf16 %v5798_v38, %v2250_v27  ;;  %v2129_v33 = vsel %vm1020_vm0, %v2088_v10, 0.0  ;;  %v2066_v4 = vsub.f32 %v7608_v11, %v2027_v49  ;;  %v2158_v27 = vld [vmem:[%s8182_s1] sm:$0xff]  ;;  %v2159_v49 = vld [vmem:[%s8182_s1 + $0x8] sm:$0xff] }
 0x58b   : > { %v2130_v44 = vadd.f32 %v2129_v33, %v2128_v25  ;;  %v2091_v20 = vand.u32 2147483647, %v2067_v9  ;;  %5858 = vmatprep.mubr.msk.f32.mxu0 %vm2520_vm2, %v2158_v27  ;;  %v2961_v33 = vld [vmem:[#allocation18 + $0x8] sm:$0xff] }
 0x58c   : > { %v5801_v52 = vpop.f32.mrb[46].mxu0  ;;  %5817 = vmatmul.mubr.msk.f32.vlgmr.msra.gmra.mrb[32].mxu1 %vm1545_vm1, %v2153_v28  ;;  %6143 = vmatprep.subr.bf16.mxu1 %v6142_v29  ;;  %v2090_v53 = vand.u32 2147483647, %v2066_v4  ;;  %v5781_v51 = vpop.f32.mrb[30].mxu1 }
 0x58d   : > { %v2260_v31 = vpop.f32.mrb[47].mxu0  ;;  %6145 = vmatpush3.bf16.msra.mxu1 %v6142_v29  ;;  %5827 = vmatprep.mubr.msk.f32.mxu1 %vm1545_vm1, %v7745_v57  ;;  %v2132_v16 = vadd.f32 %v2131_v30, %v2130_v44  ;;  %v2069_v55 = vsub.f32 %v7626_v22, %v5781_v51  ;;  %v2037_v54 = vpop.f32.mrb[31].mxu1  ;;  %v2135_v11 = vsel %vm1020_vm0, %v2091_v20, 0.0  ;;  %v2160_v29 = vld [vmem:[%s8182_s1 + $0x10] sm:$0xff]  ;;  %v2960_v30 = vld [vmem:[#allocation18] sm:$0xff]  ;;  %v2161_v20 = vld [vmem:[%s8182_s1 + $0x18] sm:$0xff] }
 0x58e   : > { %v6146_v58 = vpack.c.bf16 %v5801_v52, %v2260_v31  ;;  %v2133_v59 = vsel %vm1020_vm0, %v2090_v53, 0.0  ;;  %v2068_v50 = vsub.f32 %v7620_v17, %v2037_v54  ;;  %v6174_v53 = vpack.c.bf16 %v2961_v33, %v2960_v30  ;;  %s8189_s1 = sld [smem:[#allocation53_spill]] }
 0x58f   : > { %v2134_v26 = vadd.f32 %v2133_v59, %v2132_v16  ;;  %v2093_v60 = vand.u32 2147483647, %v2069_v55  ;;  %v6890_v55 = vmov 0.0|0.0   ;;  %v6892_v54 = vmov 0.0  }
 0x590   : > { %v5804_v63 = vpop.f32.mrb[48].mxu0  ;;  %6147 = vmatprep.subr.bf16.mxu1 %v6146_v58  ;;  %v2092_v0 = vand.u32 2147483647, %v2068_v50 }
 0x591   : > { %v2270_v1 = vpop.f32.mrb[49].mxu0  ;;  %6149 = vmatpush3.bf16.msra.mxu1 %v6146_v58  ;;  %v2136_v2 = vadd.f32 %v2135_v11, %v2134_v26  ;;  %v2139_v22 = vsel %vm1020_vm0, %v2093_v60, 0.0 }
 0x592   : > { %v6150_v61 = vpack.c.bf16 %v5804_v63, %v2270_v1  ;;  %v2137_v37 = vsel %vm1020_vm0, %v2092_v0, 0.0 }
 0x593   : > { %v2138_v5 = vadd.f32 %v2137_v37, %v2136_v2 }
 0x594   : > { %v5807_v6 = vpop.f32.mrb[50].mxu0  ;;  %5828 = vmatmul.mubr.msk.f32.vlgmr.msra.gmra.mrb[34].mxu1 %vm1545_vm1, %v2153_v28  ;;  %6151 = vmatprep.subr.bf16.mxu1 %v6150_v61 }
 0x595   : > { %v2280_v56 = vpop.f32.mrb[51].mxu0  ;;  %6153 = vmatpush3.bf16.msra.mxu1 %v6150_v61  ;;  %5838 = vmatprep.mubr.msk.f32.mxu1 %vm1545_vm1, %v7745_v57  ;;  %v2140_v17 = vadd.f32 %v2139_v22, %v2138_v5 }
 0x596   : > { %v6154_v7 = vpack.c.bf16 %v5807_v6, %v2280_v56 }
 0x597   : > { %2141 = vadd.xlane.f32.xlu0 %v2140_v17 }
 0x598   : > { %6155 = vmatprep.subr.bf16.mxu1 %v6154_v7 }
 0x599   : > { %6157 = vmatpush3.bf16.msra.mxu1 %v6154_v7 }
 0x59a   : > { %6159 = vmatprep.subr.bf16.mxu1 %v6158_v12 }
 0x59c   : > { %5839 = vmatmul.mubr.msk.f32.vlgmr.msra.gmra.mrb[36].mxu1 %vm1545_vm1, %v2153_v28 }
 0x59d   : > { %6161 = vmatpush3.bf16.msra.mxu1 %v6158_v12 }
 0x624   : > { %v2142_v13 = vpop.xlane.xlu0 %2141 }
 0x625   : > { %v2143_v14 = vrot.slane %v2142_v13, 4 }
 0x627   : > { %v2144_v3 = vadd.f32 %v2143_v14, %v2142_v13 }
 0x629   : > { %v2145_v15 = vrot.slane %v2144_v3, 2 }
 0x62b   : > { %v2146_v43 = vadd.f32 %v2145_v15, %v2144_v3 }
 0x62d   : > { %v2147_v18 = vrot.slane %v2146_v43, 1 }
 0x62f   : > { %v2148_v62 = vadd.f32 %v2147_v18, %v2146_v43 }
 0x631   : > { %6190 = vpush %v2148_v62 }
 0x65f   : > { %v7804_v57 = vpop.f32.mrb[32].mxu1 }
 0x660   : > { %v7806_v19 = vpop.f32.mrb[33].mxu1 }
 0x661   : > { %5845 = vmatprep.mubr.msk.f32.mxu1 %vm2520_vm2, %v7806_v19 }
 0x662   : > { %5846 = vmatmul.mubr.msk.f32.vlgmr.msra.gmra.mrb[38].mxu1 %vm2520_vm2, %v7804_v57  ;;  %s6191_s25 = spop %6190 }
 0x663   : > { %s2150_s10 = smul.f32 4.0690105e-05, %s6191_s25 }
 0x667   : > { %v7812_v21 = vpop.f32.mrb[34].mxu1 }
 0x668   : > { %v7814_v38 = vpop.f32.mrb[35].mxu1 }
 0x669   : > { %5848 = vmatprep.mubr.msk.f32.mxu1 %vm2520_vm2, %v7814_v38 }
 0x66a   : > { %5849 = vmatmul.mubr.msk.f32.gmra.mrb[40].mxu1 %vm2520_vm2, %v7812_v21 }
 0x66f   : > { %v7820_v10 = vpop.f32.mrb[36].mxu1 }
 0x670   : > { %v7822_v24 = vpop.f32.mrb[37].mxu1 }
 0x671   : > { %5851 = vmatprep.mubr.msk.f32.mxu1 %vm2520_vm2, %v7822_v24 }
 0x672   : > { %5852 = vmatmul.mubr.msk.f32.gmra.mrb[42].mxu1 %vm2520_vm2, %v7820_v10 }
 0x673   : > { %5878 = vmatprep.mubr.msk.f32.mxu1 %vm2520_vm2, %v2158_v27 }
 0x735   : > { %v5847_v28 = vpop.f32.mrb[38].mxu1 }
 0x736   : > { %v2605_v25 = vpop.f32.mrb[39].mxu1 }
 0x737   : > { %v6162_v9 = vpack.c.bf16 %v5847_v28, %v2605_v25 }
 0x739   : > { %6163 = vmatprep.subr.bf16.mxu0 %v6162_v9 }
 0x73a   : > { %6165 = vmatpush3.bf16.msra.mxu0 %v6162_v9 }
 0x73d   : > { %v5850_v4 = vpop.f32.mrb[40].mxu1  ;;  %5859 = vmatmul.mubr.msk.f32.vlgmr.msra.gmra.mrb[52].mxu0 %vm2520_vm2, %v2159_v49 }
 0x73e   : > { %v2615_v44 = vpop.f32.mrb[41].mxu1  ;;  %5861 = vmatprep.mubr.msk.f32.mxu0 %vm2520_vm2, %v2160_v29 }
 0x73f   : > { %v6166_v52 = vpack.c.bf16 %v5850_v4, %v2615_v44  ;;  %v2959_v44 = vld [vmem:[#allocation16] sm:$0xff] }
 0x741   : > { %5862 = vmatmul.mubr.msk.f32.gmra.mrb[54].mxu0 %vm2520_vm2, %v2161_v20  ;;  %6167 = vmatprep.subr.bf16.mxu0 %v6166_v52 }
 0x742   : > { %6169 = vmatpush3.bf16.msra.mxu0 %v6166_v52  ;;  %5868 = vmatprep.mubr.msk.f32.mxu0 %vm2520_vm2, %v2158_v27 }
 0x743   : > { %6175 = vmatprep.subr.bf16.mxu0 %v6174_v53 }
 0x745   : > { %v5853_v51 = vpop.f32.mrb[42].mxu1  ;;  %5869 = vmatmul.mubr.msk.f32.vlgmr.msra.gmra.mrb[56].mxu0 %vm2520_vm2, %v2159_v49 }
 0x746   : > { %v2625_v31 = vpop.f32.mrb[43].mxu1  ;;  %5871 = vmatprep.mubr.msk.f32.mxu0 %vm2520_vm2, %v2160_v29  ;;  %6177 = vmatpush3.bf16.msra.mxu0 %v6174_v53 }
 0x747   : > { %v6170_v16 = vpack.c.bf16 %v5853_v51, %v2625_v31  ;;  %5918 = vmatprep.subr.mxu0 %v6892_v54 }
 0x749   : > { %5872 = vmatmul.mubr.msk.f32.gmra.mrb[58].mxu0 %vm2520_vm2, %v2161_v20  ;;  %6171 = vmatprep.subr.bf16.mxu1 %v6170_v16 }
 0x74a   : > { %6173 = vmatpush3.bf16.msra.mxu1 %v6170_v16  ;;  %5888 = vmatprep.mubr.msk.f32.mxu0 %vm2520_vm2, %v7806_v19 }
 0x74b   : > { %6178 = vmatprep.subr.bf16.mxu1 %v6890_v55 }
 0x74d   : > { %5879 = vmatmul.mubr.msk.f32.vlgmr.msra.gmra.mrb[44].mxu1 %vm2520_vm2, %v2159_v49  ;;  %5889 = vmatmul.mubr.msk.f32.vlgmr.msra.gmra.mrb[60].mxu0 %vm2520_vm2, %v7804_v57 }
 0x74e   : > { %5891 = vmatprep.mubr.msk.f32.mxu0 %vm2520_vm2, %v7814_v38  ;;  %5881 = vmatprep.mubr.msk.f32.mxu1 %vm2520_vm2, %v2160_v29 }
 0x751   : > { %5882 = vmatmul.mubr.msk.f32.gmra.mrb[46].mxu1 %vm2520_vm2, %v2161_v20  ;;  %5892 = vmatmul.mubr.msk.f32.gmra.mrb[62].mxu0 %vm2520_vm2, %v7812_v21 }
 0x752   : > { %5894 = vmatprep.mubr.msk.f32.mxu0 %vm2520_vm2, %v7822_v24  ;;  %5901 = vmatprep.mubr.msk.f32.mxu1 %vm6891_vm3, %v6892_v54 }
 0x755   : > { %5895 = vmatmul.mubr.msk.f32.gmra.mrb[64].mxu0 %vm2520_vm2, %v7820_v10 }
 0x756   : > { %5920 = vmatprep.mubr.msk.f32.mxu0 %vm6891_vm3, %v6892_v54 }
 0x810   : > { %v5860_v58 = vpop.f32.mrb[52].mxu0 }
 0x811   : > { %v2902_v11 = vsub.f32 %v7649_v23, %v5860_v58  ;;  %v2712_v59 = vpop.f32.mrb[53].mxu0 }
 0x812   : > { %v2901_v50 = vsub.f32 %v7651_v34, %v2712_v59 }
 0x813   : > { %v2914_v26 = vand.u32 2147483647, %v2902_v11 }
 0x814   : > { %v2913_v60 = vand.u32 2147483647, %v2901_v50  ;;  %v5863_v63 = vpop.f32.mrb[54].mxu0 }
 0x815   : > { %v2926_v0 = vsel %vm1545_vm1, %v2914_v26, 0.0  ;;  %v2904_v1 = vsub.f32 %v7657_v35, %v5863_v63  ;;  %v2722_v2 = vpop.f32.mrb[55].mxu0 }
 0x816   : > { %v2925_v61 = vsel %vm1545_vm1, %v2913_v60, 0.0  ;;  %v2903_v37 = vsub.f32 %v7659_v36, %v2722_v2 }
 0x817   : > { %v2927_v22 = vadd.f32 %v2926_v0, %v2925_v61  ;;  %v2916_v5 = vand.u32 2147483647, %v2904_v1 }
 0x818   : > { %v2915_v6 = vand.u32 2147483647, %v2903_v37  ;;  %v5870_v56 = vpop.f32.mrb[56].mxu0 }
 0x819   : > { %v2906_v23 = vsub.f32 %v7665_v39, %v5870_v56  ;;  %v2797_v17 = vpop.f32.mrb[57].mxu0  ;;  %v2930_v8 = vsel %vm1545_vm1, %v2916_v5, 0.0  ;;  %v2964_v5 = vld [vmem:[#allocation19] sm:$0xff] }
 0x81a   : > { %v2928_v34 = vsel %vm1545_vm1, %v2915_v6, 0.0  ;;  %v2905_v7 = vsub.f32 %v7667_v40, %v2797_v17  ;;  %5919 = vmatpush3.msra.mxu0 %v2964_v5 }
 0x81b   : > { %v2929_v32 = vadd.f32 %v2928_v34, %v2927_v22  ;;  %v2918_v35 = vand.u32 2147483647, %v2906_v23  ;;  %5944 = vmatprep.subr.mxu0 %v6892_v54 }
 0x81c   : > { %v2917_v12 = vand.u32 2147483647, %v2905_v7  ;;  %v5873_v13 = vpop.f32.mrb[58].mxu0 }
 0x81d   : > { %v2931_v14 = vadd.f32 %v2930_v8, %v2929_v32  ;;  %v2908_v36 = vsub.f32 %v7673_v41, %v5873_v13  ;;  %v2807_v3 = vpop.f32.mrb[59].mxu0  ;;  %v2934_v62 = vsel %vm1545_vm1, %v2918_v35, 0.0  ;;  %v3629_v32 = vld [vmem:[%s8183_s15] sm:$0xff]  ;;  %s8188_s15 = sld [smem:[#allocation51_spill]] }
 0x81e   : > { %v2932_v15 = vsel %vm1545_vm1, %v2917_v12, 0.0  ;;  %v2907_v43 = vsub.f32 %v7675_v42, %v2807_v3  ;;  %v2962_v3 = vld [vmem:[%s8184_s6] sm:$0xff] }
 0x81f   : > { %v2933_v39 = vadd.f32 %v2932_v15, %v2931_v14  ;;  %v2920_v18 = vand.u32 2147483647, %v2908_v36 }
 0x820   : > { %v2919_v27 = vand.u32 2147483647, %v2907_v43  ;;  %v5880_v40 = vpop.f32.mrb[44].mxu1  ;;  %v5890_v28 = vpop.f32.mrb[60].mxu0  ;;  %v2963_v43 = vld [vmem:[%s8184_s6 + $0x8] sm:$0xff]  ;;  %s923_s6 = scalar_lea.vmem %s8189_s1, %s5165_s9 }
 0x821   : > { %v2935_v25 = vadd.f32 %v2934_v62, %v2933_v39  ;;  %v2910_v9 = vsub.f32 %v7681_v45, %v5880_v40  ;;  %v2882_v49 = vpop.f32.mrb[45].mxu1  ;;  %v3031_v29 = vpop.f32.mrb[61].mxu0  ;;  %v2938_v4 = vsel %vm1545_vm1, %v2920_v18, 0.0 }
 0x822   : > { %v2936_v30 = vsel %vm1545_vm1, %v2919_v27, 0.0  ;;  %v2909_v41 = vsub.f32 %v7683_v46, %v2882_v49  ;;  %v6179_v33 = vpack.c.bf16 %v5890_v28, %v3031_v29 }
 0x823   : > { %v2937_v42 = vadd.f32 %v2936_v30, %v2935_v25  ;;  %v2922_v20 = vand.u32 2147483647, %v2910_v9  ;;  %v3628_v25 = vld [vmem:[#allocation21] sm:$0xf] }
 0x824   : > { %v2921_v52 = vand.u32 2147483647, %v2909_v41  ;;  %v5883_v53 = vpop.f32.mrb[46].mxu1  ;;  %v5893_v51 = vpop.f32.mrb[62].mxu0  ;;  %6180 = vmatpush3.bf16.msra.mxu1 %v6179_v33  ;;  %v3631_v33 = vld [vmem:[#allocation22] sm:$0xf] }
 0x825   : > { %v2939_v31 = vadd.f32 %v2938_v4, %v2937_v42  ;;  %v2912_v16 = vsub.f32 %v7689_v47, %v5883_v53  ;;  %v2892_v45 = vpop.f32.mrb[47].mxu1  ;;  %v3041_v58 = vpop.f32.mrb[63].mxu0  ;;  %6181 = vmatprep.subr.bf16.mxu1 %v6890_v55  ;;  %v2942_v26 = vsel %vm1545_vm1, %v2922_v20, 0.0 }
 0x826   : > { %v2940_v11 = vsel %vm1545_vm1, %v2921_v52, 0.0  ;;  %v2911_v46 = vsub.f32 %v7691_v48, %v2892_v45  ;;  %v6182_v59 = vpack.c.bf16 %v5893_v51, %v3041_v58 }
 0x827   : > { %v2941_v50 = vadd.f32 %v2940_v11, %v2939_v31  ;;  %5902 = vmatmul.mubr.msk.f32.vlgmr.msra.gmra.mrb[48].mxu1 %vm2520_vm2, %v2959_v44  ;;  %v2924_v60 = vand.u32 2147483647, %v2912_v16 }
 0x828   : > { %v2923_v63 = vand.u32 2147483647, %v2911_v46  ;;  %v5896_v0 = vpop.f32.mrb[64].mxu0  ;;  %6183 = vmatpush3.bf16.msra.mxu1 %v6182_v59  ;;  %5908 = vmatprep.mubr.msk.f32.mxu1 %vm6891_vm3, %v6892_v54 }
 0x829   : > { %v3051_v47 = vpop.f32.mrb[65].mxu0  ;;  %6184 = vmatprep.subr.bf16.mxu1 %v6890_v55  ;;  %v2943_v1 = vadd.f32 %v2942_v26, %v2941_v50  ;;  %v2946_v37 = vsel %vm1545_vm1, %v2924_v60, 0.0 }
 0x82a   : > { %v2944_v2 = vsel %vm1545_vm1, %v2923_v63, 0.0  ;;  %v6185_v48 = vpack.c.bf16 %v5896_v0, %v3051_v47 }
 0x82b   : > { %5909 = vmatmul.mubr.msk.f32.vlgmr.msra.gmra.mrb[50].mxu1 %vm2520_vm2, %v2959_v44  ;;  %v2945_v61 = vadd.f32 %v2944_v2, %v2943_v1 }
 0x82c   : > { %6186 = vmatpush3.bf16.msra.mxu1 %v6185_v48  ;;  %5915 = vmatprep.mubr.msk.f32.mxu1 %vm6891_vm3, %v6892_v54 }
 0x82d   : > { %v2947_v22 = vadd.f32 %v2946_v37, %v2945_v61 }
 0x82f   : > { %5916 = vmatmul.mubr.msk.f32.vlgmr.msra.gmra.mrb[52].mxu1 %vm2520_vm2, %v2959_v44  ;;  %2948 = vadd.xlane.f32.xlu0 %v2947_v22 }
 0x830   : > { %5931 = vmatprep.mubr.msk.f32.mxu1 %vm3273_vm4, %v2962_v3 }
 0x8bc   : > { %v2949_v55 = vpop.xlane.xlu0 %2948 }
 0x8bd   : > { %v2950_v6 = vrot.slane %v2949_v55, 4 }
 0x8bf   : > { %v2951_v56 = vadd.f32 %v2950_v6, %v2949_v55 }
 0x8c1   : > { %v2952_v23 = vrot.slane %v2951_v56, 2 }
 0x8c3   : > { %v2953_v17 = vadd.f32 %v2952_v23, %v2951_v56 }
 0x8c5   : > { %v2954_v34 = vrot.slane %v2953_v17, 1 }
 0x8c7   : > { %v2955_v7 = vadd.f32 %v2954_v34, %v2953_v17 }
 0x8c9   : > { %6192 = vpush %v2955_v7 }
 0x8fa   : > { %v7907_v8 = vpop.f32.mrb[48].mxu1  ;;  %s6193_s8 = spop %6192 }
 0x8fb   : > { %5921 = vmatmul.mubr.msk.f32.vlgmr.msra.gmra.mrb[66].mxu0 %vm3273_vm4, %v7907_v8  ;;  %v5903_v35 = vpop.f32.mrb[49].mxu1  ;;  %s2957_s3 = smul.f32 0.00016276042, %s6193_s8 }
 0x8fc   : > { %5923 = vmatprep.mubr.msk.f32.mxu0 %vm6891_vm3, %v6892_v54  ;;  %5945 = vmatpush3.msra.mxu0 %v3629_v32 }
 0x8fd   : > { %5970 = vmatprep.subr.msk.mxu0 %vm3934_vm5, %v3631_v33  ;;  %s2958_s0 = sadd.f32 %s2957_s3, %s2150_s10 }
 0x8fe   : > { %v7913_v12 = vpop.f32.mrb[50].mxu1 }
 0x8ff   : > { %5924 = vmatmul.mubr.msk.f32.gmra.mrb[68].mxu0 %vm3273_vm4, %v7913_v12  ;;  %v5910_v13 = vpop.f32.mrb[51].mxu1 }
 0x900   : > { %5926 = vmatprep.mubr.msk.f32.mxu0 %vm6891_vm3, %v6892_v54 }
 0x902   : > { %v7919_v14 = vpop.f32.mrb[52].mxu1 }
 0x903   : > { %5927 = vmatmul.mubr.msk.f32.gmra.mrb[70].mxu0 %vm3273_vm4, %v7919_v14  ;;  %v5917_v36 = vpop.f32.mrb[53].mxu1 }
 0x904   : > { %5946 = vmatprep.mubr.msk.f32.mxu0 %vm6891_vm3, %v6892_v54 }
 0x907   : > { %5947 = vmatmul.mubr.msk.f32.vlgmr.msra.gmra.mrb[72].mxu0 %vm3273_vm4, %v7907_v8 }
 0x908   : > { %5949 = vmatprep.mubr.msk.f32.mxu0 %vm6891_vm3, %v6892_v54  ;;  %5971 = vmatpush3.msk.msra.mxu0 %vm3934_vm5, %v3631_v33 }
 0x909   : > { %5980 = vmatprep.subr.mxu0 %v6892_v54 }
 0x90b   : > { %5950 = vmatmul.mubr.msk.f32.gmra.mrb[74].mxu0 %vm3273_vm4, %v7913_v12 }
 0x90c   : > { %5952 = vmatprep.mubr.msk.f32.mxu0 %vm6891_vm3, %v6892_v54 }
 0x90f   : > { %5953 = vmatmul.mubr.msk.f32.gmra.mrb[76].mxu0 %vm3273_vm4, %v7919_v14 }
 0x9ce   : > { %v3349_v15 = vpop.f32.mrb[66].mxu0 }
 0x9cf   : > { %5929 = vmatprep.subr.mxu1 %v3349_v15  ;;  %v5922_v39 = vpop.f32.mrb[67].mxu0 }
 0x9d0   : > { %5930 = vmatpush3.msra.mxu1 %v3349_v15  ;;  %v4258_v39 = vld [vmem:[%s8186_s2] sm:$0xf] }
 0x9d1   : > { %5932 = vmatmul.mubr.msk.f32.vlgmr.msra.gmra.mrb[54].mxu1 %vm3273_vm4, %v2963_v43 }
 0x9d2   : > { %v3354_v18 = vpop.f32.mrb[68].mxu0  ;;  %5936 = vmatprep.mubr.msk.f32.mxu1 %vm3273_vm4, %v2962_v3 }
 0x9d3   : > { %5934 = vmatprep.subr.mxu1 %v3354_v18  ;;  %v5925_v62 = vpop.f32.mrb[69].mxu0 }
 0x9d4   : > { %5935 = vmatpush3.msra.mxu1 %v3354_v18 }
 0x9d5   : > { %5937 = vmatmul.mubr.msk.f32.vlgmr.msra.gmra.mrb[56].mxu1 %vm3273_vm4, %v2963_v43 }
 0x9d6   : > { %v3359_v27 = vpop.f32.mrb[70].mxu0  ;;  %5941 = vmatprep.mubr.msk.f32.mxu1 %vm3273_vm4, %v2962_v3  ;;  %v3630_v3 = vld [vmem:[%s8185_s26] sm:$0xff] }
 0x9d7   : > { %5939 = vmatprep.subr.mxu1 %v3359_v27  ;;  %v5928_v40 = vpop.f32.mrb[71].mxu0 }
 0x9d8   : > { %5940 = vmatpush3.msra.mxu1 %v3359_v27 }
 0x9d9   : > { %5942 = vmatmul.mubr.msk.f32.vlgmr.msra.gmra.mrb[58].mxu1 %vm3273_vm4, %v2963_v43  ;;  %5955 = vmatprep.subr.mxu1 %v6892_v54 }
 0x9da   : > { %v3698_v28 = vpop.f32.mrb[72].mxu0  ;;  %5957 = vmatprep.mubr.msk.f32.mxu1 %vm6891_vm3, %v6892_v54 }
 0x9db   : > { %5956 = vmatpush3.msra.mxu1 %v3698_v28  ;;  %v5948_v9 = vpop.f32.mrb[73].mxu0 }
 0x9dc   : > { %5960 = vmatprep.subr.mxu1 %v6892_v54 }
 0x9dd   : > { %5958 = vmatmul.mubr.msk.f32.vlgmr.msra.gmra.mrb[60].mxu1 %vm3273_vm4, %v3628_v25 }
 0x9de   : > { %v3703_v49 = vpop.f32.mrb[74].mxu0  ;;  %5962 = vmatprep.mubr.msk.f32.mxu1 %vm6891_vm3, %v6892_v54 }
 0x9df   : > { %5961 = vmatpush3.msra.mxu1 %v3703_v49  ;;  %v5951_v29 = vpop.f32.mrb[75].mxu0 }
 0x9e0   : > { %5965 = vmatprep.subr.mxu1 %v6892_v54 }
 0x9e1   : > { %5963 = vmatmul.mubr.msk.f32.vlgmr.msra.gmra.mrb[62].mxu1 %vm3273_vm4, %v3628_v25 }
 0x9e2   : > { %v3708_v30 = vpop.f32.mrb[76].mxu0  ;;  %5967 = vmatprep.mubr.msk.f32.mxu1 %vm6891_vm3, %v6892_v54 }
 0x9e3   : > { %5966 = vmatpush3.msra.mxu1 %v3708_v30  ;;  %v5954_v41 = vpop.f32.mrb[77].mxu0 }
 0x9e4   : > { %5975 = vmatprep.subr.mxu1 %v6892_v54 }
 0x9e5   : > { %5968 = vmatmul.mubr.msk.f32.vlgmr.msra.gmra.mrb[64].mxu1 %vm3273_vm4, %v3628_v25 }
 0x9e6   : > { %5977 = vmatprep.mubr.msk.f32.mxu1 %vm6891_vm3, %v6892_v54 }
 0xaa4   : > { %v5933_v4 = vpop.f32.mrb[54].mxu1 }
 0xaa5   : > { %v3595_v42 = vsub.f32 %v7804_v57, %v5933_v4  ;;  %v3435_v44 = vpop.f32.mrb[55].mxu1  ;;  %v4257_v4 = vld [vmem:[#allocation24] sm:$0x3] }
 0xaa6   : > { %v3594_v20 = vsub.f32 %v7806_v19, %v3435_v44 }
 0xaa7   : > { %v3601_v52 = vand.u32 2147483647, %v3595_v42 }
 0xaa8   : > { %v3600_v53 = vand.u32 2147483647, %v3594_v20  ;;  %v5938_v51 = vpop.f32.mrb[56].mxu1 }
 0xaa9   : > { %v3607_v31 = vsel %vm2520_vm2, %v3601_v52, 0.0  ;;  %v3597_v16 = vsub.f32 %v7812_v21, %v5938_v51  ;;  %v3510_v45 = vpop.f32.mrb[57].mxu1  ;;  %v4260_v51 = vld [vmem:[%s8187_s24] sm:$0x3] }
 0xaaa   : > { %v3606_v58 = vsel %vm2520_vm2, %v3600_v53, 0.0  ;;  %v3596_v11 = vsub.f32 %v7814_v38, %v3510_v45 }
 0xaab   : > { %v3608_v46 = vadd.f32 %v3607_v31, %v3606_v58  ;;  %v3603_v59 = vand.u32 2147483647, %v3597_v16 }
 0xaac   : > { %v3602_v50 = vand.u32 2147483647, %v3596_v11  ;;  %v5943_v26 = vpop.f32.mrb[58].mxu1 }
 0xaad   : > { %v3599_v57 = vsub.f32 %v7820_v10, %v5943_v26  ;;  %v3585_v60 = vpop.f32.mrb[59].mxu1  ;;  %v3611_v47 = vsel %vm2520_vm2, %v3603_v59, 0.0 }
 0xaae   : > { %v3609_v19 = vsel %vm2520_vm2, %v3602_v50, 0.0  ;;  %v3598_v63 = vsub.f32 %v7822_v24, %v3585_v60  ;;  %v6893_v50 = vmov 1983009808  }
 0xaaf   : > { %v3610_v0 = vadd.f32 %v3609_v19, %v3608_v46  ;;  %v3605_v21 = vand.u32 2147483647, %v3599_v57  ;;  %v4566_v26 = vunpack.c.l.s4 %v6893_v50  ;;  %v4568_v57 = vlaneseq }
 0xab0   : > { %v3604_v1 = vand.u32 2147483647, %v3598_v63  ;;  %v7975_v2 = vpop.f32.mrb[60].mxu1 }
 0xab1   : > { %v5959_v48 = vpop.f32.mrb[61].mxu1  ;;  %v3612_v38 = vadd.f32 %v3611_v47, %v3610_v0  ;;  %v3615_v10 = vsel %vm2520_vm2, %v3605_v21, 0.0  ;;  %v4567_v60 = vunpack.c.0.s8 %v4566_v26  ;;  %v4569_v19 = vshrl.u32 %v4568_v57, 7 }
 0xab2   : > { %v3613_v61 = vsel %vm2520_vm2, %v3604_v1, 0.0 }
 0xab3   : > { %v3614_v37 = vadd.f32 %v3613_v61, %v3612_v38  ;;  %v4570_v0 = vsub.s32 %v4567_v60, %v4569_v19 }
 0xab4   : > { %v7978_v22 = vpop.f32.mrb[62].mxu1 }
 0xab5   : > { %v3928_v24 = vcombine.low %v7975_v2, %v7978_v22  ;;  %v5964_v5 = vpop.f32.mrb[63].mxu1  ;;  %v3616_v55 = vadd.f32 %v3615_v10, %v3614_v37 }
 0xab7   : > { %3617 = vadd.xlane.f32.xlu1 %v3616_v55  ;;  %5972 = vmatprep.mubr.msk.f32.mxu0 %vm3929_vm6, %v3928_v24 }
 0xab8   : > { %v7984_v6 = vpop.f32.mrb[64].mxu1 }
 0xab9   : > { %5973 = vmatmul.mubr.msk.f32.vlgmr.msra.gmra.mrb[78].mxu0 %vm3929_vm6, %v7984_v6  ;;  %v5969_v56 = vpop.f32.mrb[65].mxu1 }
 0xaba   : > { %5982 = vmatprep.mubr.msk.f32.mxu0 %vm6891_vm3, %v6892_v54 }
 0xb44   : > { %v3618_v23 = vpop.xlane.xlu1 %3617 }
 0xb45   : > { %v3619_v17 = vrot.slane %v3618_v23, 4 }
 0xb47   : > { %v3620_v34 = vadd.f32 %v3619_v17, %v3618_v23  ;;  %v4259_v23 = vld [vmem:[%s8188_s15] sm:$0xf] }
 0xb49   : > { %v3621_v7 = vrot.slane %v3620_v34, 2 }
 0xb4b   : > { %v3622_v32 = vadd.f32 %v3621_v7, %v3620_v34 }
 0xb4d   : > { %v3623_v35 = vrot.slane %v3622_v32, 1 }
 0xb4f   : > { %v3624_v13 = vadd.f32 %v3623_v35, %v3622_v32 }
 0xb51   : > { %6194 = vpush %v3624_v13 }
 0xb82   : > { %s6195_s4 = spop %6194 }
 0xb83   : > { %s3626_s26 = smul.f32 0.0006510417, %s6195_s4 }
 0xb85   : > { %s3627_s2 = sadd.f32 %s3626_s26, %s2958_s0 }
 0xb8c   : > { %v5974_v36 = vpop.f32.mrb[78].mxu0 }
 0xb8d   : > { %v4004_v15 = vpop.f32.mrb[79].mxu0 }
 0xb8e   : > { %v4015_v43 = vcombine.high %v4004_v15, %v4004_v15  ;;  %5976 = vmatpush3.msk.msra.mxu1 %vm3934_vm5, %v4004_v15 }
 0xb8f   : > { %5978 = vmatmul.mubr.msk.f32.vlgmr.msra.gmra.mrb[66].mxu1 %vm3929_vm6, %v3630_v3  ;;  %5985 = vmatprep.subr.mxu1 %v6892_v54 }
 0xb90   : > { %5981 = vmatpush3.msk.msra.mxu0 %vm3934_vm5, %v4015_v43  ;;  %5986 = vmatpush3.msk.msra.mxu1 %vm3934_vm5, %v5974_v36 }
 0xb91   : > { %5983 = vmatmul.mubr.msk.f32.vlgmr.msra.gmra.mrb[80].mxu0 %vm3929_vm6, %v3630_v3  ;;  %5987 = vmatprep.mubr.msk.f32.mxu1 %vm6891_vm3, %v6892_v54 }
 0xb92   : > { %5992 = vmatprep.mubr.msk.f32.mxu0 %vm3929_vm6, %v3928_v24  ;;  %5990 = vmatprep.subr.msk.mxu0 %vm3934_vm5, %v4258_v39 }
 0xb93   : > { %5988 = vmatmul.mubr.msk.f32.vlgmr.msra.gmra.mrb[68].mxu1 %vm3929_vm6, %v3630_v3  ;;  %5991 = vmatpush3.msk.msra.mxu0 %vm3934_vm5, %v4258_v39 }
 0xb94   : > { %5995 = vmatprep.subr.mxu1 %v6892_v54  ;;  %5997 = vmatprep.mubr.msk.f32.mxu1 %vm6891_vm3, %v6892_v54 }
 0xb95   : > { %5993 = vmatmul.mubr.msk.f32.vlgmr.msra.gmra.mrb[82].mxu0 %vm3929_vm6, %v7984_v6  ;;  %6000 = vmatprep.subr.mxu0 %v6892_v54 }
 0xb96   : > { %6002 = vmatprep.mubr.msk.f32.mxu0 %vm6891_vm3, %v6892_v54 }
 0xc62   : > { %v4087_v18 = vpop.f32.mrb[66].mxu1 }
 0xc63   : > { %v4235_v62 = vsub.f32 %v7907_v8, %v4087_v18  ;;  %v5979_v27 = vpop.f32.mrb[67].mxu1 }
 0xc64   : > { %v4159_v40 = vpop.f32.mrb[80].mxu0 }
 0xc65   : > { %v4238_v28 = vand.u32 2147483647, %v4235_v62  ;;  %v4236_v25 = vsub.f32 %v7913_v12, %v4159_v40  ;;  %v5984_v9 = vpop.f32.mrb[81].mxu0 }
 0xc66   : > { %v4231_v49 = vpop.f32.mrb[68].mxu1 }
 0xc67   : > { %v4239_v29 = vand.u32 2147483647, %v4236_v25  ;;  %v4237_v30 = vsub.f32 %v7919_v14, %v4231_v49  ;;  %v5989_v41 = vpop.f32.mrb[69].mxu1  ;;  %v4241_v42 = vsel %vm3273_vm4, %v4238_v28, 0.0 }
 0xc68   : > { %v5994_v33 = vpop.f32.mrb[82].mxu0 }
 0xc69   : > { %v4242_v44 = vsel %vm3273_vm4, %v4239_v29, 0.0  ;;  %v4240_v20 = vand.u32 2147483647, %v4237_v30  ;;  %v4330_v52 = vpop.f32.mrb[83].mxu0 }
 0xc6a   : > { %v4341_v8 = vcombine.high %v4330_v52, %v4330_v52  ;;  %5996 = vmatpush3.msk.msra.mxu1 %vm3934_vm5, %v4330_v52  ;;  %v4243_v53 = vadd.f32 %v4242_v44, %v4241_v42 }
 0xc6b   : > { %5998 = vmatmul.mubr.msk.f32.vlgmr.msra.gmra.mrb[70].mxu1 %vm3929_vm6, %v4257_v4  ;;  %6005 = vmatprep.subr.mxu1 %v6892_v54  ;;  %v4244_v12 = vsel %vm3273_vm4, %v4240_v20, 0.0 }
 0xc6c   : > { %6001 = vmatpush3.msk.msra.mxu0 %vm3934_vm5, %v4341_v8  ;;  %6006 = vmatpush3.msk.msra.mxu1 %vm3934_vm5, %v5994_v33  ;;  %v4245_v14 = vadd.f32 %v4244_v12, %v4243_v53 }
 0xc6d   : > { %6003 = vmatmul.mubr.msk.f32.vlgmr.msra.gmra.mrb[84].mxu0 %vm3929_vm6, %v4257_v4  ;;  %6007 = vmatprep.mubr.msk.f32.mxu1 %vm6891_vm3, %v6892_v54 }
 0xc6e   : > { %4246 = vadd.xlane.f32.xlu1 %v4245_v14  ;;  %6010 = vmatprep.subr.mxu0 %v6892_v54 }
 0xc6f   : > { %6008 = vmatmul.mubr.msk.f32.vlgmr.msra.gmra.mrb[72].mxu1 %vm3929_vm6, %v4257_v4  ;;  %6012 = vmatprep.mubr.msk.f32.mxu0 %vm6891_vm3, %v6892_v54 }
 0xc70   : > { %6015 = vmatprep.subr.mxu1 %v6892_v54  ;;  %6017 = vmatprep.mubr.msk.f32.mxu1 %vm6891_vm3, %v6892_v54 }
 0xc71   : > { %6011 = vmatpush3.msk.msra.mxu0 %vm4583_vm7, %v4260_v51 }
 0xc72   : > { %6020 = vmatprep.subr.mxu0 %v6892_v54 }
 0xcfb   : > { %v4247_v31 = vpop.xlane.xlu1 %4246 }
 0xcfc   : > { %v4248_v16 = vrot.slane %v4247_v31, 4 }
 0xcfe   : > { %v4249_v45 = vadd.f32 %v4248_v16, %v4247_v31 }
 0xd00   : > { %v4250_v58 = vrot.slane %v4249_v45, 2 }
 0xd02   : > { %v4251_v11 = vadd.f32 %v4250_v58, %v4249_v45 }
 0xd04   : > { %v4252_v46 = vrot.slane %v4251_v11, 1 }
 0xd06   : > { %v4253_v59 = vadd.f32 %v4252_v46, %v4251_v11 }
 0xd08   : > { %6196 = vpush %v4253_v59 }
 0xd39   : > { %s6197_s27 = spop %6196 }
 0xd3a   : > { %s4255_s19 = smul.f32 0.0026041667, %s6197_s27 }
 0xd3c   : > { %s4256_s24 = sadd.f32 %s4255_s19, %s3627_s2 }
 0xd3e   : > { %v4413_v63 = vpop.f32.mrb[70].mxu1 }
 0xd3f   : > { %v5999_v47 = vpop.f32.mrb[71].mxu1 }
 0xd40   : > { %v4485_v21 = vpop.f32.mrb[84].mxu0 }
 0xd41   : > { %v4564_v1 = vcombine.low %v4413_v63, %v4485_v21  ;;  %v6004_v48 = vpop.f32.mrb[85].mxu0 }
 0xd42   : > { %v4557_v38 = vpop.f32.mrb[72].mxu1 }
 0xd43   : > { %v4571_v61 = vrot.slane %v4564_v1, %v4570_v0  ;;  %v4578_v37 = vrot.slane %v4557_v38, %v4570_v0  ;;  %v6009_v10 = vpop.f32.mrb[73].mxu1 }
 0xd45   : > { %v4579_v24 = vcombine.low %v4571_v61, %v4578_v37 }
 0xd47   : > { %6013 = vmatmul.mubr.msk.f32.vlgmr.msra.gmra.mrb[86].mxu0 %vm4580_vm8, %v4579_v24 }
 0xd48   : > { %6022 = vmatprep.mubr.msk.f32.mxu0 %vm6891_vm3, %v6892_v54 }
 0xe1a   : > { %v4653_v5 = vpop.f32.mrb[86].mxu0 }
 0xe1b   : > { %v4658_v55 = vcombine.high %v4653_v5, %v4653_v5  ;;  %v4665_v56 = vrot.slane %v4653_v5, %v4570_v0  ;;  %v6014_v17 = vpop.f32.mrb[87].mxu0 }
 0xe1d   : > { %v4672_v34 = vrot.slane %v4658_v55, %v4570_v0  ;;  %v4673_v7 = vcombine.high %v4665_v56, %v4665_v56  ;;  %6016 = vmatpush3.msk.msra.mxu1 %vm4583_vm7, %v4665_v56 }
 0xe1e   : > { %6018 = vmatmul.mubr.msk.f32.vlgmr.msra.gmra.mrb[74].mxu1 %vm4580_vm8, %v4259_v23  ;;  %6025 = vmatprep.subr.mxu1 %v6892_v54 }
 0xe1f   : > { %6021 = vmatpush3.msk.msra.mxu0 %vm4583_vm7, %v4673_v7  ;;  %6026 = vmatpush3.msk.msra.mxu1 %vm4583_vm7, %v4672_v34 }
 0xe20   : > { %6023 = vmatmul.mubr.msk.f32.vlgmr.msra.gmra.mrb[88].mxu0 %vm4580_vm8, %v4259_v23  ;;  %6027 = vmatprep.mubr.msk.f32.mxu1 %vm6891_vm3, %v6892_v54 }
 0xe22   : > { %6028 = vmatmul.mubr.msk.f32.vlgmr.msra.gmra.mrb[76].mxu1 %vm4580_vm8, %v4259_v23 }
 0xef1   : > { %v4745_v32 = vpop.f32.mrb[74].mxu1 }
 0xef2   : > { %v4893_v35 = vsub.f32 %v7975_v2, %v4745_v32  ;;  %v6019_v13 = vpop.f32.mrb[75].mxu1 }
 0xef3   : > { %v4817_v36 = vpop.f32.mrb[88].mxu0 }
 0xef4   : > { %v4894_v3 = vsub.f32 %v7978_v22, %v4817_v36  ;;  %v6024_v15 = vpop.f32.mrb[89].mxu0  ;;  %v4896_v39 = vand.u32 2147483647, %v4893_v35 }
 0xef5   : > { %v4889_v43 = vpop.f32.mrb[76].mxu1 }
 0xef6   : > { %v4897_v18 = vand.u32 2147483647, %v4894_v3  ;;  %v4895_v62 = vsub.f32 %v7984_v6, %v4889_v43  ;;  %v6029_v27 = vpop.f32.mrb[77].mxu1 }
 0xef8   : > { %v4901_v40 = vcombine.low %v4896_v39, %v4897_v18  ;;  %v4898_v28 = vand.u32 2147483647, %v4895_v62 }
 0xefa   : > { %v4903_v54 = vsel %vm3929_vm6, %v4901_v40, 0.0  ;;  %v4905_v25 = vsel %vm4904_vm9, %v4898_v28, 0.0 }
 0xefb   : > { %v4906_v9 = vadd.f32 %v4905_v25, %v4903_v54 }
 0xefd   : > { %4907 = vadd.xlane.f32.xlu0 %v4906_v9 }
 0xf8a   : > { %v4908_v2 = vpop.xlane.xlu0 %4907 }
 0xf8b   : > { %v4909_v49 = vrot.slane %v4908_v2, 4 }
 0xf8d   : > { %v4910_v22 = vadd.f32 %v4909_v49, %v4908_v2 }
 0xf8f   : > { %v4911_v29 = vrot.slane %v4910_v22, 2 }
 0xf91   : > { %v4912_v30 = vadd.f32 %v4911_v29, %v4910_v22 }
 0xf93   : > { %v4913_v41 = vrot.slane %v4912_v30, 1 }
 0xf95   : > { %v4914_v33 = vadd.f32 %v4913_v41, %v4912_v30 }
 0xf97   : > { %6198 = vpush %v4914_v33 }
 0xfc8   : > { %s6199_s30 = spop %6198 }
 0xfc9   : > { %s4916_s21 = smul.f32 0.010416667, %s6199_s30 }
 0xfcb   : > { %s4917_s12 = sadd.f32 %s4916_s21, %s4256_s24 }
 0xfcd   : > { %v4918_v6 = vstv %s4917_s12 }
 0xfce   : > { %4919 = vst [vmem:[%s923_s6] sm:$0xff] %v4918_v6 }
 0xfcf PF: > { %p41_p13 = scmp.ge.s32.totalorder %s7333_s5, 4   ;;  %s8190_s3 = smov %s6863_s28 }
 0xfd0   : > { %s8191_s28 = smov %s6867_s29  ;;  %s8192_s29 = smov %s7344_s7 }
 0xfd1   : > { %s8193_s30 = smov %s7333_s5  ;;  %43 = sbr.rel (!%p41_p13) target bundleno = 31 (0x1f), region = 213 }
 0xfd8   :  { %4939 = vsyncpa [#allocation3], 1 }
 0xfd9   :  { %4941 = vsyncpa [#allocation3 + $0x1], 1 }
 0xfda   :  { %4942 = vsyncpa [#allocation5], 1 }
 0xfdb   :  { %4944 = vsyncpa [#allocation5 + $0x1], 1 }
 0xfdc   :  { %4945 = vsyncpa [#allocation8], 1 }
 0xfdd   :  { %4946 = vsyncpa [#allocation11], 1 }
 0xfde   :  { %4947 = vsyncpa [#allocation14], 1 }
 0xfdf   :  { %4948 = vsyncpa [#allocation17], 1 }
 0xfe0   :  { %4949 = vsyncpa [#allocation20], 1 }
 0xfe1   :  { %4950 = vsyncpa [#allocation23], 1 }

</bundles_post_ra>
